<compile_context>
chip_gen: v5e
topology: v5e:2x2
jax: 0.10.0
libtpu: 0.0.40
codegen_flags: <defaults>
</compile_context>

<pallas_src>
import math
import jax
import jax.numpy as jnp
import numpy as np
from jax.experimental import pallas as pl
from jax.experimental.pallas import tpu as pltpu

# Model hyper-parameters (Transformer(dim, depth, heads, dim_head, mlp_dim))
DIM = 32
DEPTH = 2
HEADS = 4
DIM_HEAD = 8
MLP_DIM = 64
INNER = HEADS * DIM_HEAD          # inner attention dim (project_out=True since heads != 1)
LN_EPS = 1e-5
SCALE = DIM_HEAD ** -0.5
LANES = 128

# ---- packed weight-slab layout (per layer; row offsets 8-aligned; every param at lane 0) ----
R_WQKV = 0                        # (DIM, 3*INNER)  rows   0: 32, lanes 0:96
R_WO = 32                         # (INNER, DIM)    rows  32: 64, lanes 0:32
R_W1 = 64                         # (DIM, MLP_DIM)  rows  64: 96, lanes 0:64
R_W2 = 96                         # (MLP_DIM, DIM)  rows  96:160, lanes 0:32
R_LN1G, R_LN1B, R_BO, R_LN2G, R_LN2B, R_B1, R_B2 = 160, 161, 162, 163, 164, 165, 166
ROWS_PER_LAYER = 168              # multiple of 8 so every layer stays sublane-aligned


def _layer_norm(x, gamma, beta):
    mean = jnp.mean(x, axis=-1, keepdims=True)
    var = jnp.mean(jnp.square(x - mean), axis=-1, keepdims=True)
    return (x - mean) * jax.lax.rsqrt(var + LN_EPS) * gamma + beta


def _erf(x):
    # Abramowitz & Stegun 7.1.26 polynomial, |error| < 1.5e-7,
    # built only from Mosaic-supported elementwise ops.
    a1, a2, a3, a4, a5 = 0.254829592, -0.284496736, 1.421413741, -1.453152027, 1.061405429
    p = 0.3275911
    s = jnp.where(x < 0.0, -1.0, 1.0)
    z = jnp.abs(x)
    t = 1.0 / (1.0 + p * z)
    poly = ((((a5 * t + a4) * t + a3) * t + a2) * t + a1) * t
    return s * (1.0 - poly * jnp.exp(-z * z))


def _gelu_exact(x):
    # matches torch.nn.GELU() (erf-based, approximate='none') to f32 precision
    return 0.5 * x * (1.0 + _erf(x * (1.0 / math.sqrt(2.0))))


def transformer_kernel(x_ref, slab_ref, const_ref, out_ref):
    """One batch element per grid step; all layers fused, all heads via block-diagonal K/V."""
    N, D = x_ref.shape
    C = HEADS * N                                   # score columns: c = head*N + key_token
    depth = slab_ref.shape[0] // ROWS_PER_LAYER

    x = x_ref[...].astype(jnp.float32)              # (N, D)

    # Precomputed constants (hoisted host-side, loaded once, shared by every layer):
    kv_head_mask = const_ref[0:C, 0:INNER]          # (C, INNER): keep head (c//N)'s feature block
    seg_to_head = const_ref[C:2 * C, 0:HEADS]       # (C, HEADS): column -> its head (group sum)
    head_to_col = const_ref[2 * C:2 * C + HEADS, 0:C]   # (HEADS, C): broadcast back (exact, 1 term)

    for layer in range(depth):
        base = layer * ROWS_PER_LAYER
        wqkv = slab_ref[base + R_WQKV:base + R_WQKV + DIM, 0:3 * INNER]
        wo = slab_ref[base + R_WO:base + R_WO + INNER, 0:DIM]
        w1 = slab_ref[base + R_W1:base + R_W1 + DIM, 0:MLP_DIM]
        w2 = slab_ref[base + R_W2:base + R_W2 + MLP_DIM, 0:DIM]
        ln1_g = slab_ref[base + R_LN1G:base + R_LN1G + 1, 0:DIM]
        ln1_b = slab_ref[base + R_LN1B:base + R_LN1B + 1, 0:DIM]
        bo = slab_ref[base + R_BO:base + R_BO + 1, 0:DIM]
        ln2_g = slab_ref[base + R_LN2G:base + R_LN2G + 1, 0:DIM]
        ln2_b = slab_ref[base + R_LN2B:base + R_LN2B + 1, 0:DIM]
        b1 = slab_ref[base + R_B1:base + R_B1 + 1, 0:MLP_DIM]
        b2 = slab_ref[base + R_B2:base + R_B2 + 1, 0:DIM]

        # ---------- PreNorm + multi-head self-attention (all heads fused, no per-head loop) ----------
        xn = _layer_norm(x, ln1_g, ln1_b)
        qkv = jnp.dot(xn, wqkv, preferred_element_type=jnp.float32)     # (N, 3*INNER) single MXU push
        q = qkv[:, 0:INNER]
        k = qkv[:, INNER:2 * INNER]
        v = qkv[:, 2 * INNER:3 * INNER]

        # replicate K/V once per head along sublanes, zero everything but that head's feature block
        k_t = jnp.concatenate([k] * HEADS, axis=0) * kv_head_mask       # (C, INNER)
        v_t = jnp.concatenate([v] * HEADS, axis=0) * kv_head_mask       # (C, INNER)

        # all per-head score blocks in one MXU matmul
        s = jax.lax.dot_general(q, k_t, (((1,), (1,)), ((), ())),
                                preferred_element_type=jnp.float32) * SCALE   # (N, C)
        # global row-max shift is softmax-invariant; head score spreads here are O(1), no underflow risk
        s = s - jnp.max(s, axis=-1, keepdims=True)
        e = jnp.exp(s)
        # per-(head) denominators: group-sum against (C,HEADS) indicator, exact broadcast back
        denom_h = jnp.dot(e, seg_to_head, preferred_element_type=jnp.float32)        # (N, HEADS)
        inv = jnp.dot(1.0 / denom_h, head_to_col, preferred_element_type=jnp.float32)  # (N, C) exact
        p = e * inv                                                      # softmax weights
        o = jnp.dot(p, v_t, preferred_element_type=jnp.float32)         # (N, INNER), heads concatenated

        attn = jnp.dot(o, wo, preferred_element_type=jnp.float32) + bo
        # TODO(synk): dropout (p=0.2) omitted — inference/eval semantics only.
        x = x + attn                                                     # residual

        # ---------- PreNorm + FeedForward ----------
        xn2 = _layer_norm(x, ln2_g, ln2_b)
        h = jnp.dot(xn2, w1, preferred_element_type=jnp.float32) + b1
        h = _gelu_exact(h)
        y = jnp.dot(h, w2, preferred_element_type=jnp.float32) + b2
        x = x + y                                                        # residual

    out_ref[...] = x.astype(out_ref.dtype)


def pack_params(params):
    """Pack all per-layer parameters into one lane-dense (DEPTH*168, 128) f32 slab."""
    depth = len(params)
    slab = np.zeros((depth * ROWS_PER_LAYER, LANES), np.float32)
    for i, (ln1_g, ln1_b, wqkv, wo, bo, ln2_g, ln2_b, w1, b1, w2, b2) in enumerate(params):
        base = i * ROWS_PER_LAYER
        slab[base + R_WQKV:base + R_WQKV + DIM, 0:3 * INNER] = np.asarray(wqkv)
        slab[base + R_WO:base + R_WO + INNER, 0:DIM] = np.asarray(wo)
        slab[base + R_W1:base + R_W1 + DIM, 0:MLP_DIM] = np.asarray(w1)
        slab[base + R_W2:base + R_W2 + MLP_DIM, 0:DIM] = np.asarray(w2)
        slab[base + R_LN1G, 0:DIM] = np.asarray(ln1_g).reshape(-1)
        slab[base + R_LN1B, 0:DIM] = np.asarray(ln1_b).reshape(-1)
        slab[base + R_BO, 0:DIM] = np.asarray(bo).reshape(-1)
        slab[base + R_LN2G, 0:DIM] = np.asarray(ln2_g).reshape(-1)
        slab[base + R_LN2B, 0:DIM] = np.asarray(ln2_b).reshape(-1)
        slab[base + R_B1, 0:MLP_DIM] = np.asarray(b1).reshape(-1)
        slab[base + R_B2, 0:DIM] = np.asarray(b2).reshape(-1)
    return jnp.asarray(slab)


def make_consts(n):
    """Head-block mask + segment-sum indicator matrices, precomputed host-side."""
    c = HEADS * n
    rows = ((2 * c + HEADS + 7) // 8) * 8
    const = np.zeros((rows, LANES), np.float32)
    ci = np.arange(c)
    const[0:c, 0:INNER] = (ci[:, None] // n == np.arange(INNER)[None, :] // DIM_HEAD)
    const[c:2 * c, 0:HEADS] = (ci[:, None] // n == np.arange(HEADS)[None, :])
    const[2 * c:2 * c + HEADS, 0:c] = (np.arange(HEADS)[:, None] == ci[None, :] // n)
    return jnp.asarray(const)


def transformer_forward(x, params):
    """Single pallas_call; grid over batch, weights resident as one packed slab."""
    B, N, D = x.shape
    slab = pack_params(params)
    consts = make_consts(N)

    return pl.pallas_call(
        transformer_kernel,
        out_shape=jax.ShapeDtypeStruct((B, N, D), x.dtype),
        grid_spec=pltpu.PrefetchScalarGridSpec(
            num_scalar_prefetch=0,
            grid=(B,),
            in_specs=[
                pl.BlockSpec((None, N, D), lambda b: (b, 0, 0)),   # per-batch activations
                pl.BlockSpec(slab.shape, lambda b: (0, 0)),        # weight slab (resident, 1 DMA)
                pl.BlockSpec(consts.shape, lambda b: (0, 0)),      # constant masks (resident)
            ],
            out_specs=pl.BlockSpec((None, N, D), lambda b: (b, 0, 0)),
        ),
        compiler_params=pltpu.CompilerParams(
            dimension_semantics=("parallel",),                     # batch axis -> 2 TCs on v7x
            vmem_limit_bytes=32 * 1024 * 1024,
        ),
    )(x, slab, consts)


def init_params(key, depth=DEPTH):
    params = []
    for _ in range(depth):
        key, *ks = jax.random.split(key, 7)
        ln1_g = jnp.ones((1, DIM), jnp.float32)
        ln1_b = jnp.zeros((1, DIM), jnp.float32)
        wqkv = jax.random.normal(ks[0], (DIM, 3 * INNER), jnp.float32) / math.sqrt(DIM)
        wo = jax.random.normal(ks[1], (INNER, DIM), jnp.float32) / math.sqrt(INNER)
        bo = jax.random.normal(ks[2], (1, DIM), jnp.float32) * 0.01
        ln2_g = jnp.ones((1, DIM), jnp.float32)
        ln2_b = jnp.zeros((1, DIM), jnp.float32)
        w1 = jax.random.normal(ks[3], (DIM, MLP_DIM), jnp.float32) / math.sqrt(DIM)
        b1 = jax.random.normal(ks[4], (1, MLP_DIM), jnp.float32) * 0.01
        w2 = jax.random.normal(ks[5], (MLP_DIM, DIM), jnp.float32) / math.sqrt(MLP_DIM)
        b2 = jnp.zeros((1, DIM), jnp.float32)
        params.append((ln1_g, ln1_b, wqkv, wo, bo, ln2_g, ln2_b, w1, b1, w2, b2))
    return params


def reference_forward(x, params):
    # pure-JAX reference (identical math to the PyTorch module in eval mode).
    # HIGHEST precision so the reference itself is not degraded by XLA's default
    # bf16 matmul passes on TPU.
    hp = jax.lax.Precision.HIGHEST
    for (ln1_g, ln1_b, wqkv, wo, bo, ln2_g, ln2_b, w1, b1, w2, b2) in params:
        B, N, _ = x.shape
        xn = _layer_norm(x, ln1_g, ln1_b)
        qkv = jnp.matmul(xn, wqkv, precision=hp)
        q, k, v = jnp.split(qkv, 3, axis=-1)
        q = q.reshape(B, N, HEADS, DIM_HEAD).transpose(0, 2, 1, 3)
        k = k.reshape(B, N, HEADS, DIM_HEAD).transpose(0, 2, 1, 3)
        v = v.reshape(B, N, HEADS, DIM_HEAD).transpose(0, 2, 1, 3)
        dots = jnp.einsum("bhid,bhjd->bhij", q, k, precision=hp) * SCALE
        attn = jax.nn.softmax(dots, axis=-1)
        out = jnp.einsum("bhij,bhjd->bhid", attn, v, precision=hp)
        out = out.transpose(0, 2, 1, 3).reshape(B, N, INNER)
        x = jnp.matmul(out, wo, precision=hp) + bo + x
        xn2 = _layer_norm(x, ln2_g, ln2_b)
        h1 = jax.nn.gelu(jnp.matmul(xn2, w1, precision=hp) + b1, approximate=False)
        x = jnp.matmul(h1, w2, precision=hp) + b2 + x
    return x


if __name__ == "__main__":
    B, N = 2, 8
    key = jax.random.PRNGKey(0)
    kx, kp = jax.random.split(key)
    x = jax.random.normal(kx, (B, N, DIM), jnp.float32)
    params = init_params(kp)

    out = jax.block_until_ready(transformer_forward(x, params))

    assert out.shape == (B, N, DIM)
    assert bool(jnp.all(jnp.isfinite(out)))
    ref = reference_forward(x, params)
    err = float(jnp.max(jnp.abs(out - ref)))
    # exact softmax division + f32 MXU matmuls + erf polynomial -> error dominated by
    # EUP transcendental rounding (~1e-5 expected); 2e-3 leaves ample margin.
    assert jnp.allclose(out, ref, atol=2e-3, rtol=2e-3), err
    print("KERNEL_OK")
</pallas_src>

<mosaic_0001>
module attributes {stable_mosaic.version = 11 : i64} {
  func.func @transformer_kernel(%arg0: i32, %arg1: memref<1x8x32xf32, #tpu.memory_space<vmem>>, %arg2: memref<336x128xf32, #tpu.memory_space<vmem>>, %arg3: memref<72x128xf32, #tpu.memory_space<vmem>>, %arg4: memref<1x8x32xf32, #tpu.memory_space<vmem>>) attributes {dimension_semantics = [#tpu.dimension_semantics<parallel>], iteration_bounds = array<i64: 2>, scalar_prefetch = 0 : i64, scratch_operands = 0 : i64, tpu.core_type = #tpu.core_type<tc>, window_params = [{transform_indices = @transform_0, window_bounds = array<i64: 1, 8, 32>}, {pipeline_mode = #tpu.pipeline_mode<synchronous>, transform_indices = @transform_1, window_bounds = array<i64: 336, 128>}, {pipeline_mode = #tpu.pipeline_mode<synchronous>, transform_indices = @transform_2, window_bounds = array<i64: 72, 128>}, {transform_indices = @transform_3, window_bounds = array<i64: 1, 8, 32>}]} {
    %c0 = arith.constant 0 : index
    %c0_0 = arith.constant 0 : index
    %c0_1 = arith.constant 0 : index
    %0 = vector.load %arg1[%c0, %c0_0, %c0_1] : memref<1x8x32xf32, #tpu.memory_space<vmem>>, vector<1x8x32xf32>
    %1 = vector.shape_cast %0 : vector<1x8x32xf32> to vector<8x32xf32>
    %c0_2 = arith.constant 0 : index
    %c0_3 = arith.constant 0 : index
    %2 = vector.load %arg3[%c0_2, %c0_3] : memref<72x128xf32, #tpu.memory_space<vmem>>, vector<32x32xf32>
    %c32 = arith.constant 32 : index
    %c0_4 = arith.constant 0 : index
    %3 = vector.load %arg3[%c32, %c0_4] : memref<72x128xf32, #tpu.memory_space<vmem>>, vector<32x4xf32>
    %c64 = arith.constant 64 : index
    %c0_5 = arith.constant 0 : index
    %4 = vector.load %arg3[%c64, %c0_5] : memref<72x128xf32, #tpu.memory_space<vmem>>, vector<4x32xf32>
    %c0_6 = arith.constant 0 : index
    %c0_7 = arith.constant 0 : index
    %5 = vector.load %arg2[%c0_6, %c0_7] : memref<336x128xf32, #tpu.memory_space<vmem>>, vector<32x96xf32>
    %c32_8 = arith.constant 32 : index
    %c0_9 = arith.constant 0 : index
    %6 = vector.load %arg2[%c32_8, %c0_9] : memref<336x128xf32, #tpu.memory_space<vmem>>, vector<32x32xf32>
    %c64_10 = arith.constant 64 : index
    %c0_11 = arith.constant 0 : index
    %7 = vector.load %arg2[%c64_10, %c0_11] : memref<336x128xf32, #tpu.memory_space<vmem>>, vector<32x64xf32>
    %c96 = arith.constant 96 : index
    %c0_12 = arith.constant 0 : index
    %8 = vector.load %arg2[%c96, %c0_12] : memref<336x128xf32, #tpu.memory_space<vmem>>, vector<64x32xf32>
    %c160 = arith.constant 160 : index
    %c0_13 = arith.constant 0 : index
    %9 = vector.load %arg2[%c160, %c0_13] : memref<336x128xf32, #tpu.memory_space<vmem>>, vector<1x32xf32>
    %c161 = arith.constant 161 : index
    %c0_14 = arith.constant 0 : index
    %10 = vector.load %arg2[%c161, %c0_14] : memref<336x128xf32, #tpu.memory_space<vmem>>, vector<1x32xf32>
    %c162 = arith.constant 162 : index
    %c0_15 = arith.constant 0 : index
    %11 = vector.load %arg2[%c162, %c0_15] : memref<336x128xf32, #tpu.memory_space<vmem>>, vector<1x32xf32>
    %c163 = arith.constant 163 : index
    %c0_16 = arith.constant 0 : index
    %12 = vector.load %arg2[%c163, %c0_16] : memref<336x128xf32, #tpu.memory_space<vmem>>, vector<1x32xf32>
    %c164 = arith.constant 164 : index
    %c0_17 = arith.constant 0 : index
    %13 = vector.load %arg2[%c164, %c0_17] : memref<336x128xf32, #tpu.memory_space<vmem>>, vector<1x32xf32>
    %c165 = arith.constant 165 : index
    %c0_18 = arith.constant 0 : index
    %14 = vector.load %arg2[%c165, %c0_18] : memref<336x128xf32, #tpu.memory_space<vmem>>, vector<1x64xf32>
    %c166 = arith.constant 166 : index
    %c0_19 = arith.constant 0 : index
    %15 = vector.load %arg2[%c166, %c0_19] : memref<336x128xf32, #tpu.memory_space<vmem>>, vector<1x32xf32>
    %cst = arith.constant dense<0.000000e+00> : vector<8xf32>
    %16 = vector.multi_reduction <add>, %1, %cst [1] : vector<8x32xf32> to vector<8xf32>
    %17 = vector.shape_cast %16 : vector<8xf32> to vector<8x1xf32>
    %cst_20 = arith.constant 3.200000e+01 : f32
    %18 = vector.broadcast %cst_20 : f32 to vector<8x1xf32>
    %19 = arith.divf %17, %18 : vector<8x1xf32>
    %20 = vector.broadcast %19 : vector<8x1xf32> to vector<8x32xf32>
    %21 = arith.subf %1, %20 : vector<8x32xf32>
    %22 = arith.mulf %21, %21 : vector<8x32xf32>
    %cst_21 = arith.constant dense<0.000000e+00> : vector<8xf32>
    %23 = vector.multi_reduction <add>, %22, %cst_21 [1] : vector<8x32xf32> to vector<8xf32>
    %24 = vector.shape_cast %23 : vector<8xf32> to vector<8x1xf32>
    %cst_22 = arith.constant 3.200000e+01 : f32
    %25 = vector.broadcast %cst_22 : f32 to vector<8x1xf32>
    %26 = arith.divf %24, %25 : vector<8x1xf32>
    %27 = vector.broadcast %19 : vector<8x1xf32> to vector<8x32xf32>
    %28 = arith.subf %1, %27 : vector<8x32xf32>
    %cst_23 = arith.constant 9.99999974E-6 : f32
    %29 = vector.broadcast %cst_23 : f32 to vector<8x1xf32>
    %30 = arith.addf %26, %29 : vector<8x1xf32>
    %31 = math.rsqrt %30 : vector<8x1xf32>
    %32 = vector.broadcast %31 : vector<8x1xf32> to vector<8x32xf32>
    %33 = arith.mulf %28, %32 : vector<8x32xf32>
    %34 = vector.broadcast %9 : vector<1x32xf32> to vector<8x32xf32>
    %35 = arith.mulf %33, %34 : vector<8x32xf32>
    %36 = vector.broadcast %10 : vector<1x32xf32> to vector<8x32xf32>
    %37 = arith.addf %35, %36 : vector<8x32xf32>
    %cst_24 = arith.constant dense<0.000000e+00> : vector<8x96xf32>
    %38 = tpu.matmul %37, %5, %cst_24 {dimension_numbers = #tpu.dot_dimension_numbers<[1], [0], [0], [1], [0, 0, 1, 1], [], []>} : vector<8x32xf32>, vector<32x96xf32>, vector<8x96xf32> -> vector<8x96xf32>
    %39 = vector.extract_strided_slice %38 {offsets = [0, 0], sizes = [8, 32], strides = [1, 1]} : vector<8x96xf32> to vector<8x32xf32>
    %40 = vector.extract_strided_slice %38 {offsets = [0, 32], sizes = [8, 32], strides = [1, 1]} : vector<8x96xf32> to vector<8x32xf32>
    %41 = vector.extract_strided_slice %38 {offsets = [0, 64], sizes = [8, 32], strides = [1, 1]} : vector<8x96xf32> to vector<8x32xf32>
    %42 = tpu.concatenate %40, %40, %40, %40 in 0 : vector<8x32xf32>, vector<8x32xf32>, vector<8x32xf32>, vector<8x32xf32> -> vector<32x32xf32>
    %43 = arith.mulf %42, %2 : vector<32x32xf32>
    %44 = tpu.concatenate %41, %41, %41, %41 in 0 : vector<8x32xf32>, vector<8x32xf32>, vector<8x32xf32>, vector<8x32xf32> -> vector<32x32xf32>
    %45 = arith.mulf %44, %2 : vector<32x32xf32>
    %cst_25 = arith.constant dense<0.000000e+00> : vector<8x32xf32>
    %46 = tpu.matmul %39, %43, %cst_25 {dimension_numbers = #tpu.dot_dimension_numbers<[1], [1], [0], [0], [0, 0, 1, 0], [], []>} : vector<8x32xf32>, vector<32x32xf32>, vector<8x32xf32> -> vector<8x32xf32>
    %cst_26 = arith.constant 0.353553385 : f32
    %47 = vector.broadcast %cst_26 : f32 to vector<8x32xf32>
    %48 = arith.mulf %46, %47 : vector<8x32xf32>
    %cst_27 = arith.constant dense<0xFF800000> : vector<8xf32>
    %49 = vector.multi_reduction <maximumf>, %48, %cst_27 [1] : vector<8x32xf32> to vector<8xf32>
    %50 = vector.shape_cast %49 : vector<8xf32> to vector<8x1xf32>
    %51 = vector.broadcast %50 : vector<8x1xf32> to vector<8x32xf32>
    %52 = arith.subf %48, %51 : vector<8x32xf32>
    %53 = math.exp %52 : vector<8x32xf32>
    %cst_28 = arith.constant dense<0.000000e+00> : vector<8x4xf32>
    %54 = tpu.matmul %53, %3, %cst_28 {dimension_numbers = #tpu.dot_dimension_numbers<[1], [0], [0], [1], [0, 0, 1, 1], [], []>} : vector<8x32xf32>, vector<32x4xf32>, vector<8x4xf32> -> vector<8x4xf32>
    %cst_29 = arith.constant 1.000000e+00 : f32
    %55 = vector.broadcast %cst_29 : f32 to vector<8x4xf32>
    %56 = arith.divf %55, %54 : vector<8x4xf32>
    %cst_30 = arith.constant dense<0.000000e+00> : vector<8x32xf32>
    %57 = tpu.matmul %56, %4, %cst_30 {dimension_numbers = #tpu.dot_dimension_numbers<[1], [0], [0], [1], [0, 0, 1, 1], [], []>} : vector<8x4xf32>, vector<4x32xf32>, vector<8x32xf32> -> vector<8x32xf32>
    %58 = arith.mulf %53, %57 : vector<8x32xf32>
    %cst_31 = arith.constant dense<0.000000e+00> : vector<8x32xf32>
    %59 = tpu.matmul %58, %45, %cst_31 {dimension_numbers = #tpu.dot_dimension_numbers<[1], [0], [0], [1], [0, 0, 1, 1], [], []>} : vector<8x32xf32>, vector<32x32xf32>, vector<8x32xf32> -> vector<8x32xf32>
    %cst_32 = arith.constant dense<0.000000e+00> : vector<8x32xf32>
    %60 = tpu.matmul %59, %6, %cst_32 {dimension_numbers = #tpu.dot_dimension_numbers<[1], [0], [0], [1], [0, 0, 1, 1], [], []>} : vector<8x32xf32>, vector<32x32xf32>, vector<8x32xf32> -> vector<8x32xf32>
    %61 = vector.broadcast %11 : vector<1x32xf32> to vector<8x32xf32>
    %62 = arith.addf %60, %61 : vector<8x32xf32>
    %63 = arith.addf %1, %62 : vector<8x32xf32>
    %cst_33 = arith.constant dense<0.000000e+00> : vector<8xf32>
    %64 = vector.multi_reduction <add>, %63, %cst_33 [1] : vector<8x32xf32> to vector<8xf32>
    %65 = vector.shape_cast %64 : vector<8xf32> to vector<8x1xf32>
    %cst_34 = arith.constant 3.200000e+01 : f32
    %66 = vector.broadcast %cst_34 : f32 to vector<8x1xf32>
    %67 = arith.divf %65, %66 : vector<8x1xf32>
    %68 = vector.broadcast %67 : vector<8x1xf32> to vector<8x32xf32>
    %69 = arith.subf %63, %68 : vector<8x32xf32>
    %70 = arith.mulf %69, %69 : vector<8x32xf32>
    %cst_35 = arith.constant dense<0.000000e+00> : vector<8xf32>
    %71 = vector.multi_reduction <add>, %70, %cst_35 [1] : vector<8x32xf32> to vector<8xf32>
    %72 = vector.shape_cast %71 : vector<8xf32> to vector<8x1xf32>
    %cst_36 = arith.constant 3.200000e+01 : f32
    %73 = vector.broadcast %cst_36 : f32 to vector<8x1xf32>
    %74 = arith.divf %72, %73 : vector<8x1xf32>
    %75 = vector.broadcast %67 : vector<8x1xf32> to vector<8x32xf32>
    %76 = arith.subf %63, %75 : vector<8x32xf32>
    %cst_37 = arith.constant 9.99999974E-6 : f32
    %77 = vector.broadcast %cst_37 : f32 to vector<8x1xf32>
    %78 = arith.addf %74, %77 : vector<8x1xf32>
    %79 = math.rsqrt %78 : vector<8x1xf32>
    %80 = vector.broadcast %79 : vector<8x1xf32> to vector<8x32xf32>
    %81 = arith.mulf %76, %80 : vector<8x32xf32>
    %82 = vector.broadcast %12 : vector<1x32xf32> to vector<8x32xf32>
    %83 = arith.mulf %81, %82 : vector<8x32xf32>
    %84 = vector.broadcast %13 : vector<1x32xf32> to vector<8x32xf32>
    %85 = arith.addf %83, %84 : vector<8x32xf32>
    %cst_38 = arith.constant dense<0.000000e+00> : vector<8x64xf32>
    %86 = tpu.matmul %85, %7, %cst_38 {dimension_numbers = #tpu.dot_dimension_numbers<[1], [0], [0], [1], [0, 0, 1, 1], [], []>} : vector<8x32xf32>, vector<32x64xf32>, vector<8x64xf32> -> vector<8x64xf32>
    %87 = vector.broadcast %14 : vector<1x64xf32> to vector<8x64xf32>
    %88 = arith.addf %86, %87 : vector<8x64xf32>
    %cst_39 = arith.constant 5.000000e-01 : f32
    %89 = vector.broadcast %cst_39 : f32 to vector<8x64xf32>
    %90 = arith.mulf %89, %88 : vector<8x64xf32>
    %cst_40 = arith.constant 0.707106769 : f32
    %91 = vector.broadcast %cst_40 : f32 to vector<8x64xf32>
    %92 = arith.mulf %88, %91 : vector<8x64xf32>
    %cst_41 = arith.constant 0.000000e+00 : f32
    %93 = vector.broadcast %cst_41 : f32 to vector<8x64xf32>
    %94 = arith.cmpf olt, %92, %93 : vector<8x64xf32>
    %cst_42 = arith.constant -1.000000e+00 : f32
    %cst_43 = arith.constant 1.000000e+00 : f32
    %95 = vector.broadcast %cst_42 : f32 to vector<8x64xf32>
    %96 = vector.broadcast %cst_43 : f32 to vector<8x64xf32>
    %97 = arith.select %94, %95, %96 : vector<8x64xi1>, vector<8x64xf32>
    %98 = math.absf %92 : vector<8x64xf32>
    %cst_44 = arith.constant 0.327591091 : f32
    %99 = vector.broadcast %cst_44 : f32 to vector<8x64xf32>
    %100 = arith.mulf %99, %98 : vector<8x64xf32>
    %cst_45 = arith.constant 1.000000e+00 : f32
    %101 = vector.broadcast %cst_45 : f32 to vector<8x64xf32>
    %102 = arith.addf %101, %100 : vector<8x64xf32>
    %cst_46 = arith.constant 1.000000e+00 : f32
    %103 = vector.broadcast %cst_46 : f32 to vector<8x64xf32>
    %104 = arith.divf %103, %102 : vector<8x64xf32>
    %cst_47 = arith.constant 1.06140542 : f32
    %105 = vector.broadcast %cst_47 : f32 to vector<8x64xf32>
    %106 = arith.mulf %105, %104 : vector<8x64xf32>
    %cst_48 = arith.constant -1.45315206 : f32
    %107 = vector.broadcast %cst_48 : f32 to vector<8x64xf32>
    %108 = arith.addf %106, %107 : vector<8x64xf32>
    %109 = arith.mulf %108, %104 : vector<8x64xf32>
    %cst_49 = arith.constant 1.42141378 : f32
    %110 = vector.broadcast %cst_49 : f32 to vector<8x64xf32>
    %111 = arith.addf %109, %110 : vector<8x64xf32>
    %112 = arith.mulf %111, %104 : vector<8x64xf32>
    %cst_50 = arith.constant -0.284496725 : f32
    %113 = vector.broadcast %cst_50 : f32 to vector<8x64xf32>
    %114 = arith.addf %112, %113 : vector<8x64xf32>
    %115 = arith.mulf %114, %104 : vector<8x64xf32>
    %cst_51 = arith.constant 0.254829586 : f32
    %116 = vector.broadcast %cst_51 : f32 to vector<8x64xf32>
    %117 = arith.addf %115, %116 : vector<8x64xf32>
    %118 = arith.mulf %117, %104 : vector<8x64xf32>
    %cst_52 = arith.constant 0.000000e+00 : f32
    %119 = vector.broadcast %cst_52 : f32 to vector<8x64xf32>
    %120 = arith.subf %119, %98 : vector<8x64xf32>
    %121 = arith.mulf %120, %98 : vector<8x64xf32>
    %122 = math.exp %121 : vector<8x64xf32>
    %123 = arith.mulf %118, %122 : vector<8x64xf32>
    %cst_53 = arith.constant 1.000000e+00 : f32
    %124 = vector.broadcast %cst_53 : f32 to vector<8x64xf32>
    %125 = arith.subf %124, %123 : vector<8x64xf32>
    %126 = arith.mulf %97, %125 : vector<8x64xf32>
    %cst_54 = arith.constant 1.000000e+00 : f32
    %127 = vector.broadcast %cst_54 : f32 to vector<8x64xf32>
    %128 = arith.addf %127, %126 : vector<8x64xf32>
    %129 = arith.mulf %90, %128 : vector<8x64xf32>
    %cst_55 = arith.constant dense<0.000000e+00> : vector<8x32xf32>
    %130 = tpu.matmul %129, %8, %cst_55 {dimension_numbers = #tpu.dot_dimension_numbers<[1], [0], [0], [1], [0, 0, 1, 1], [], []>} : vector<8x64xf32>, vector<64x32xf32>, vector<8x32xf32> -> vector<8x32xf32>
    %131 = vector.broadcast %15 : vector<1x32xf32> to vector<8x32xf32>
    %132 = arith.addf %130, %131 : vector<8x32xf32>
    %133 = arith.addf %63, %132 : vector<8x32xf32>
    %c168 = arith.constant 168 : index
    %c0_56 = arith.constant 0 : index
    %134 = vector.load %arg2[%c168, %c0_56] : memref<336x128xf32, #tpu.memory_space<vmem>>, vector<32x96xf32>
    %c200 = arith.constant 200 : index
    %c0_57 = arith.constant 0 : index
    %135 = vector.load %arg2[%c200, %c0_57] : memref<336x128xf32, #tpu.memory_space<vmem>>, vector<32x32xf32>
    %c232 = arith.constant 232 : index
    %c0_58 = arith.constant 0 : index
    %136 = vector.load %arg2[%c232, %c0_58] : memref<336x128xf32, #tpu.memory_space<vmem>>, vector<32x64xf32>
    %c264 = arith.constant 264 : index
    %c0_59 = arith.constant 0 : index
    %137 = vector.load %arg2[%c264, %c0_59] : memref<336x128xf32, #tpu.memory_space<vmem>>, vector<64x32xf32>
    %c328 = arith.constant 328 : index
    %c0_60 = arith.constant 0 : index
    %138 = vector.load %arg2[%c328, %c0_60] : memref<336x128xf32, #tpu.memory_space<vmem>>, vector<1x32xf32>
    %c329 = arith.constant 329 : index
    %c0_61 = arith.constant 0 : index
    %139 = vector.load %arg2[%c329, %c0_61] : memref<336x128xf32, #tpu.memory_space<vmem>>, vector<1x32xf32>
    %c330 = arith.constant 330 : index
    %c0_62 = arith.constant 0 : index
    %140 = vector.load %arg2[%c330, %c0_62] : memref<336x128xf32, #tpu.memory_space<vmem>>, vector<1x32xf32>
    %c331 = arith.constant 331 : index
    %c0_63 = arith.constant 0 : index
    %141 = vector.load %arg2[%c331, %c0_63] : memref<336x128xf32, #tpu.memory_space<vmem>>, vector<1x32xf32>
    %c332 = arith.constant 332 : index
    %c0_64 = arith.constant 0 : index
    %142 = vector.load %arg2[%c332, %c0_64] : memref<336x128xf32, #tpu.memory_space<vmem>>, vector<1x32xf32>
    %c333 = arith.constant 333 : index
    %c0_65 = arith.constant 0 : index
    %143 = vector.load %arg2[%c333, %c0_65] : memref<336x128xf32, #tpu.memory_space<vmem>>, vector<1x64xf32>
    %c334 = arith.constant 334 : index
    %c0_66 = arith.constant 0 : index
    %144 = vector.load %arg2[%c334, %c0_66] : memref<336x128xf32, #tpu.memory_space<vmem>>, vector<1x32xf32>
    %cst_67 = arith.constant dense<0.000000e+00> : vector<8xf32>
    %145 = vector.multi_reduction <add>, %133, %cst_67 [1] : vector<8x32xf32> to vector<8xf32>
    %146 = vector.shape_cast %145 : vector<8xf32> to vector<8x1xf32>
    %cst_68 = arith.constant 3.200000e+01 : f32
    %147 = vector.broadcast %cst_68 : f32 to vector<8x1xf32>
    %148 = arith.divf %146, %147 : vector<8x1xf32>
    %149 = vector.broadcast %148 : vector<8x1xf32> to vector<8x32xf32>
    %150 = arith.subf %133, %149 : vector<8x32xf32>
    %151 = arith.mulf %150, %150 : vector<8x32xf32>
    %cst_69 = arith.constant dense<0.000000e+00> : vector<8xf32>
    %152 = vector.multi_reduction <add>, %151, %cst_69 [1] : vector<8x32xf32> to vector<8xf32>
    %153 = vector.shape_cast %152 : vector<8xf32> to vector<8x1xf32>
    %cst_70 = arith.constant 3.200000e+01 : f32
    %154 = vector.broadcast %cst_70 : f32 to vector<8x1xf32>
    %155 = arith.divf %153, %154 : vector<8x1xf32>
    %156 = vector.broadcast %148 : vector<8x1xf32> to vector<8x32xf32>
    %157 = arith.subf %133, %156 : vector<8x32xf32>
    %cst_71 = arith.constant 9.99999974E-6 : f32
    %158 = vector.broadcast %cst_71 : f32 to vector<8x1xf32>
    %159 = arith.addf %155, %158 : vector<8x1xf32>
    %160 = math.rsqrt %159 : vector<8x1xf32>
    %161 = vector.broadcast %160 : vector<8x1xf32> to vector<8x32xf32>
    %162 = arith.mulf %157, %161 : vector<8x32xf32>
    %163 = vector.broadcast %138 : vector<1x32xf32> to vector<8x32xf32>
    %164 = arith.mulf %162, %163 : vector<8x32xf32>
    %165 = vector.broadcast %139 : vector<1x32xf32> to vector<8x32xf32>
    %166 = arith.addf %164, %165 : vector<8x32xf32>
    %cst_72 = arith.constant dense<0.000000e+00> : vector<8x96xf32>
    %167 = tpu.matmul %166, %134, %cst_72 {dimension_numbers = #tpu.dot_dimension_numbers<[1], [0], [0], [1], [0, 0, 1, 1], [], []>} : vector<8x32xf32>, vector<32x96xf32>, vector<8x96xf32> -> vector<8x96xf32>
    %168 = vector.extract_strided_slice %167 {offsets = [0, 0], sizes = [8, 32], strides = [1, 1]} : vector<8x96xf32> to vector<8x32xf32>
    %169 = vector.extract_strided_slice %167 {offsets = [0, 32], sizes = [8, 32], strides = [1, 1]} : vector<8x96xf32> to vector<8x32xf32>
    %170 = vector.extract_strided_slice %167 {offsets = [0, 64], sizes = [8, 32], strides = [1, 1]} : vector<8x96xf32> to vector<8x32xf32>
    %171 = tpu.concatenate %169, %169, %169, %169 in 0 : vector<8x32xf32>, vector<8x32xf32>, vector<8x32xf32>, vector<8x32xf32> -> vector<32x32xf32>
    %172 = arith.mulf %171, %2 : vector<32x32xf32>
    %173 = tpu.concatenate %170, %170, %170, %170 in 0 : vector<8x32xf32>, vector<8x32xf32>, vector<8x32xf32>, vector<8x32xf32> -> vector<32x32xf32>
    %174 = arith.mulf %173, %2 : vector<32x32xf32>
    %cst_73 = arith.constant dense<0.000000e+00> : vector<8x32xf32>
    %175 = tpu.matmul %168, %172, %cst_73 {dimension_numbers = #tpu.dot_dimension_numbers<[1], [1], [0], [0], [0, 0, 1, 0], [], []>} : vector<8x32xf32>, vector<32x32xf32>, vector<8x32xf32> -> vector<8x32xf32>
    %cst_74 = arith.constant 0.353553385 : f32
    %176 = vector.broadcast %cst_74 : f32 to vector<8x32xf32>
    %177 = arith.mulf %175, %176 : vector<8x32xf32>
    %cst_75 = arith.constant dense<0xFF800000> : vector<8xf32>
    %178 = vector.multi_reduction <maximumf>, %177, %cst_75 [1] : vector<8x32xf32> to vector<8xf32>
    %179 = vector.shape_cast %178 : vector<8xf32> to vector<8x1xf32>
    %180 = vector.broadcast %179 : vector<8x1xf32> to vector<8x32xf32>
    %181 = arith.subf %177, %180 : vector<8x32xf32>
    %182 = math.exp %181 : vector<8x32xf32>
    %cst_76 = arith.constant dense<0.000000e+00> : vector<8x4xf32>
    %183 = tpu.matmul %182, %3, %cst_76 {dimension_numbers = #tpu.dot_dimension_numbers<[1], [0], [0], [1], [0, 0, 1, 1], [], []>} : vector<8x32xf32>, vector<32x4xf32>, vector<8x4xf32> -> vector<8x4xf32>
    %cst_77 = arith.constant 1.000000e+00 : f32
    %184 = vector.broadcast %cst_77 : f32 to vector<8x4xf32>
    %185 = arith.divf %184, %183 : vector<8x4xf32>
    %cst_78 = arith.constant dense<0.000000e+00> : vector<8x32xf32>
    %186 = tpu.matmul %185, %4, %cst_78 {dimension_numbers = #tpu.dot_dimension_numbers<[1], [0], [0], [1], [0, 0, 1, 1], [], []>} : vector<8x4xf32>, vector<4x32xf32>, vector<8x32xf32> -> vector<8x32xf32>
    %187 = arith.mulf %182, %186 : vector<8x32xf32>
    %cst_79 = arith.constant dense<0.000000e+00> : vector<8x32xf32>
    %188 = tpu.matmul %187, %174, %cst_79 {dimension_numbers = #tpu.dot_dimension_numbers<[1], [0], [0], [1], [0, 0, 1, 1], [], []>} : vector<8x32xf32>, vector<32x32xf32>, vector<8x32xf32> -> vector<8x32xf32>
    %cst_80 = arith.constant dense<0.000000e+00> : vector<8x32xf32>
    %189 = tpu.matmul %188, %135, %cst_80 {dimension_numbers = #tpu.dot_dimension_numbers<[1], [0], [0], [1], [0, 0, 1, 1], [], []>} : vector<8x32xf32>, vector<32x32xf32>, vector<8x32xf32> -> vector<8x32xf32>
    %190 = vector.broadcast %140 : vector<1x32xf32> to vector<8x32xf32>
    %191 = arith.addf %189, %190 : vector<8x32xf32>
    %192 = arith.addf %133, %191 : vector<8x32xf32>
    %cst_81 = arith.constant dense<0.000000e+00> : vector<8xf32>
    %193 = vector.multi_reduction <add>, %192, %cst_81 [1] : vector<8x32xf32> to vector<8xf32>
    %194 = vector.shape_cast %193 : vector<8xf32> to vector<8x1xf32>
    %cst_82 = arith.constant 3.200000e+01 : f32
    %195 = vector.broadcast %cst_82 : f32 to vector<8x1xf32>
    %196 = arith.divf %194, %195 : vector<8x1xf32>
    %197 = vector.broadcast %196 : vector<8x1xf32> to vector<8x32xf32>
    %198 = arith.subf %192, %197 : vector<8x32xf32>
    %199 = arith.mulf %198, %198 : vector<8x32xf32>
    %cst_83 = arith.constant dense<0.000000e+00> : vector<8xf32>
    %200 = vector.multi_reduction <add>, %199, %cst_83 [1] : vector<8x32xf32> to vector<8xf32>
    %201 = vector.shape_cast %200 : vector<8xf32> to vector<8x1xf32>
    %cst_84 = arith.constant 3.200000e+01 : f32
    %202 = vector.broadcast %cst_84 : f32 to vector<8x1xf32>
    %203 = arith.divf %201, %202 : vector<8x1xf32>
    %204 = vector.broadcast %196 : vector<8x1xf32> to vector<8x32xf32>
    %205 = arith.subf %192, %204 : vector<8x32xf32>
    %cst_85 = arith.constant 9.99999974E-6 : f32
    %206 = vector.broadcast %cst_85 : f32 to vector<8x1xf32>
    %207 = arith.addf %203, %206 : vector<8x1xf32>
    %208 = math.rsqrt %207 : vector<8x1xf32>
    %209 = vector.broadcast %208 : vector<8x1xf32> to vector<8x32xf32>
    %210 = arith.mulf %205, %209 : vector<8x32xf32>
    %211 = vector.broadcast %141 : vector<1x32xf32> to vector<8x32xf32>
    %212 = arith.mulf %210, %211 : vector<8x32xf32>
    %213 = vector.broadcast %142 : vector<1x32xf32> to vector<8x32xf32>
    %214 = arith.addf %212, %213 : vector<8x32xf32>
    %cst_86 = arith.constant dense<0.000000e+00> : vector<8x64xf32>
    %215 = tpu.matmul %214, %136, %cst_86 {dimension_numbers = #tpu.dot_dimension_numbers<[1], [0], [0], [1], [0, 0, 1, 1], [], []>} : vector<8x32xf32>, vector<32x64xf32>, vector<8x64xf32> -> vector<8x64xf32>
    %216 = vector.broadcast %143 : vector<1x64xf32> to vector<8x64xf32>
    %217 = arith.addf %215, %216 : vector<8x64xf32>
    %cst_87 = arith.constant 5.000000e-01 : f32
    %218 = vector.broadcast %cst_87 : f32 to vector<8x64xf32>
    %219 = arith.mulf %218, %217 : vector<8x64xf32>
    %cst_88 = arith.constant 0.707106769 : f32
    %220 = vector.broadcast %cst_88 : f32 to vector<8x64xf32>
    %221 = arith.mulf %217, %220 : vector<8x64xf32>
    %cst_89 = arith.constant 0.000000e+00 : f32
    %222 = vector.broadcast %cst_89 : f32 to vector<8x64xf32>
    %223 = arith.cmpf olt, %221, %222 : vector<8x64xf32>
    %cst_90 = arith.constant -1.000000e+00 : f32
    %cst_91 = arith.constant 1.000000e+00 : f32
    %224 = vector.broadcast %cst_90 : f32 to vector<8x64xf32>
    %225 = vector.broadcast %cst_91 : f32 to vector<8x64xf32>
    %226 = arith.select %223, %224, %225 : vector<8x64xi1>, vector<8x64xf32>
    %227 = math.absf %221 : vector<8x64xf32>
    %cst_92 = arith.constant 0.327591091 : f32
    %228 = vector.broadcast %cst_92 : f32 to vector<8x64xf32>
    %229 = arith.mulf %228, %227 : vector<8x64xf32>
    %cst_93 = arith.constant 1.000000e+00 : f32
    %230 = vector.broadcast %cst_93 : f32 to vector<8x64xf32>
    %231 = arith.addf %230, %229 : vector<8x64xf32>
    %cst_94 = arith.constant 1.000000e+00 : f32
    %232 = vector.broadcast %cst_94 : f32 to vector<8x64xf32>
    %233 = arith.divf %232, %231 : vector<8x64xf32>
    %cst_95 = arith.constant 1.06140542 : f32
    %234 = vector.broadcast %cst_95 : f32 to vector<8x64xf32>
    %235 = arith.mulf %234, %233 : vector<8x64xf32>
    %cst_96 = arith.constant -1.45315206 : f32
    %236 = vector.broadcast %cst_96 : f32 to vector<8x64xf32>
    %237 = arith.addf %235, %236 : vector<8x64xf32>
    %238 = arith.mulf %237, %233 : vector<8x64xf32>
    %cst_97 = arith.constant 1.42141378 : f32
    %239 = vector.broadcast %cst_97 : f32 to vector<8x64xf32>
    %240 = arith.addf %238, %239 : vector<8x64xf32>
    %241 = arith.mulf %240, %233 : vector<8x64xf32>
    %cst_98 = arith.constant -0.284496725 : f32
    %242 = vector.broadcast %cst_98 : f32 to vector<8x64xf32>
    %243 = arith.addf %241, %242 : vector<8x64xf32>
    %244 = arith.mulf %243, %233 : vector<8x64xf32>
    %cst_99 = arith.constant 0.254829586 : f32
    %245 = vector.broadcast %cst_99 : f32 to vector<8x64xf32>
    %246 = arith.addf %244, %245 : vector<8x64xf32>
    %247 = arith.mulf %246, %233 : vector<8x64xf32>
    %cst_100 = arith.constant 0.000000e+00 : f32
    %248 = vector.broadcast %cst_100 : f32 to vector<8x64xf32>
    %249 = arith.subf %248, %227 : vector<8x64xf32>
    %250 = arith.mulf %249, %227 : vector<8x64xf32>
    %251 = math.exp %250 : vector<8x64xf32>
    %252 = arith.mulf %247, %251 : vector<8x64xf32>
    %cst_101 = arith.constant 1.000000e+00 : f32
    %253 = vector.broadcast %cst_101 : f32 to vector<8x64xf32>
    %254 = arith.subf %253, %252 : vector<8x64xf32>
    %255 = arith.mulf %226, %254 : vector<8x64xf32>
    %cst_102 = arith.constant 1.000000e+00 : f32
    %256 = vector.broadcast %cst_102 : f32 to vector<8x64xf32>
    %257 = arith.addf %256, %255 : vector<8x64xf32>
    %258 = arith.mulf %219, %257 : vector<8x64xf32>
    %cst_103 = arith.constant dense<0.000000e+00> : vector<8x32xf32>
    %259 = tpu.matmul %258, %137, %cst_103 {dimension_numbers = #tpu.dot_dimension_numbers<[1], [0], [0], [1], [0, 0, 1, 1], [], []>} : vector<8x64xf32>, vector<64x32xf32>, vector<8x32xf32> -> vector<8x32xf32>
    %260 = vector.broadcast %144 : vector<1x32xf32> to vector<8x32xf32>
    %261 = arith.addf %259, %260 : vector<8x32xf32>
    %262 = arith.addf %192, %261 : vector<8x32xf32>
    %c0_104 = arith.constant 0 : index
    %c0_105 = arith.constant 0 : index
    %c0_106 = arith.constant 0 : index
    %263 = vector.load %arg4[%c0_104, %c0_105, %c0_106] : memref<1x8x32xf32, #tpu.memory_space<vmem>>, vector<1x8x32xf32>
    %264 = vector.shape_cast %263 : vector<1x8x32xf32> to vector<8x32xf32>
    %265 = vector.shape_cast %262 : vector<8x32xf32> to vector<1x8x32xf32>
    tpu.vector_store %arg4[%c0_104, %c0_105, %c0_106], %265 {strides = array<i32>} : memref<1x8x32xf32, #tpu.memory_space<vmem>>, vector<1x8x32xf32>,
    return
  }
  func.func @transform_0(%arg0: i32) -> (i32, i32, i32) {
    %c0_i32 = arith.constant 0 : i32
    %c0_i32_0 = arith.constant 0 : i32
    %c0_i32_1 = arith.constant 0 : i32
    return %arg0, %c0_i32, %c0_i32_0 : i32, i32, i32
  }
  func.func @transform_1(%arg0: i32) -> (i32, i32) {
    %c0_i32 = arith.constant 0 : i32
    %c0_i32_0 = arith.constant 0 : i32
    %c0_i32_1 = arith.constant 0 : i32
    return %c0_i32, %c0_i32_0 : i32, i32
  }
  func.func @transform_2(%arg0: i32) -> (i32, i32) {
    %c0_i32 = arith.constant 0 : i32
    %c0_i32_0 = arith.constant 0 : i32
    %c0_i32_1 = arith.constant 0 : i32
    return %c0_i32, %c0_i32_0 : i32, i32
  }
  func.func @transform_3(%arg0: i32) -> (i32, i32, i32) {
    %c0_i32 = arith.constant 0 : i32
    %c0_i32_0 = arith.constant 0 : i32
    %c0_i32_1 = arith.constant 0 : i32
    return %arg0, %c0_i32, %c0_i32_0 : i32, i32, i32
  }
}

</mosaic_0001>

<bundles_post_ra>
// kernel: tpu_custom_call.1
= control target key start
LH: loop header
LB: loop body
LE: loop exit
PB: predicated region body
PF: predicated region fallthrough
CT: control target
= control target key end

     0   :  { %8 = vsyncpa [#allocation3], 0  ;;  %s1782_s0 = inlined_call_operand.hbm [shape: f32[2,8,32], index: 0, kind: input, shape index: {}]   ;;  %s1783_s1 = inlined_call_operand.hbm [shape: f32[336,128], index: 1, kind: input, shape index: {}]   ;;  %s1784_s2 = inlined_call_operand.hbm [shape: f32[72,128], index: 2, kind: input, shape index: {}]   ;;  %s1785_s3 = inlined_call_operand.hbm [shape: f32[2,8,32], index: 3, kind: output, shape index: {}]  }
   0x1   :  { %10 = vsyncpa [#allocation3 + $0x1], 0 }
   0x2   :  { %11 = vsyncpa [#allocation6], 0 }
   0x3   :  { %12 = vsyncpa [#allocation4], 0 }
   0x4   :  { %14 = vsyncpa [#allocation4 + $0x1], 0  ;;  %s1496_s12 = smov 0   ;;  %s1498_s13 = smov 0  }
   0x5   :  { %s1500_s14 = smov 0   ;;  %s1502_s15 = smov 0  }
   0x6 LB: > { %s130_s18 = sshll.u32 %s1783_s1, 4  ;;  %s1520_s19 = sadd.s32 4294967295, %s1465_s15   ;;  %s1465_s15 = sphi %s1502_s15, %s1796_s15   ;;  %s1461_s14 = sphi %s1500_s14, %s1795_s14   ;;  %s1457_s13 = sphi %s1498_s13, %s1794_s13   ;;  %s1453_s12 = sphi %s1496_s12, %s1793_s12   ;;  %s131_s18 = int_to_ptr.hbm [resolvable:$true] %s130_s18 }
   0x7   : > { %p1130_p0 = scmp.ge.s32.totalorder %s1465_s15, 1  ;;  %p41_p1 = scmp.eq.s32.totalorder %s1520_s19, 0 }
   0x8   : > { %p119_p2 = scmp.lt.s32.totalorder %s1465_s15, 3  ;;  %s1467_s21 = smov [#allocation5]  }
   0x9   : > { %s132_s22 = sshll.u32 %s1467_s21, 4  ;;  %s144_s25 = sshll.u32 %s1784_s2, 4  ;;  %s133_s22 = int_to_ptr.vmem [resolvable:$true] %s132_s22  ;;  %s145_s25 = int_to_ptr.hbm [resolvable:$true] %s144_s25 }
   0xa   : > { %p1525_p3 = pnand %p1130_p0, %p119_p2  ;;  %s1468_s26 = smov [#allocation7]  }
   0xb   : > { %s146_s27 = sshll.u32 %s1468_s26, 4  ;;  %s1469_s28 = smov 128   ;;  %s147_s27 = int_to_ptr.vmem [resolvable:$true] %s146_s27 }
   0xc   : > { %p1183_p4 = pneg %p1525_p3  ;;  %s1470_s29 = smov 8  }
   0xd   : > { %s1129_s30 = sadd.s32 4294967294, %s1465_s15   ;;  %s1539_s4 = sadd.s32 1, %s1465_s15  }
   0xe   : > { %p1184_p6 = pnand %p1183_p4, %p41_p1  ;;  %s24_s5 = ssub.s32 %s1465_s15, %s1539_s4 }
   0xf   : > { %s27_s6 = sadd.s32 1, %s1461_s14  ;;  %p25_p7 = scmp.eq.s32.totalorder %s24_s5, 0 }
  0x10   : > { %1186 = dma.hbm_to_vmem [thread:$0]  (!%p1184_p6), %s131_s18, 5376, %s133_s22, [#allocation6], %s1469_s28, %s1469_s28, %s1470_s29  }
  0x11   : > { %1189 = dma.hbm_to_vmem [thread:$0]  (!%p1184_p6), %s145_s25, 1152, %s147_s27, [#allocation6], %s1469_s28, %s1469_s28, %s1470_s29  }
  0x12   : > { %p34_p8 = scmp.ne.s32.totalorder %s1461_s14, %s1457_s13  ;;  %p35_p9 = scmp.eq.s32.totalorder %s1465_s15, 0 }
  0x13   : > { %p40_p10 = scmp.ne.s32.totalorder %s1457_s13, %s1453_s12  ;;  %p106_p13 = scmp.eq.s32.totalorder %s1520_s19, 1 }
  0x14   : > { %s1550_s7 = scalar_select %p25_p7, %s1461_s14, %s27_s6  }
  0x15   : > { %p1552_p11 = por %p35_p9, %p34_p8  ;;  %p1558_p12 = por %p41_p1, %p40_p10 }
  0x16   : > { %p112_p0 = scmp.eq.s32.totalorder %s1129_s30, 1  ;;  %p1200_p2 = scmp.lt.s32.totalorder %s1465_s15, 2 }
  0x17   : > { %s160_s10 = sand.u32 1, %s1461_s14   ;;  %p1565_p4 = por %p106_p13, %p34_p8 }
  0x18   : > { %p1569_p6 = por %p112_p0, %p40_p10  ;;  %s1134_s17 = sshll.u32 %s160_s10, 3 }
  0x19   : > { %s1135_s18 = sshll.u32 %s1465_s15, 3  ;;  %s164_s24 = scalar_lea.vmem [#allocation2], %s1134_s17 }
  0x1a   : > { %s168_s23 = scalar_lea.hbm %s1782_s0, %s1135_s18  ;;  %s172_s25 = sshll.u32 %s164_s24, 4  ;;  %s173_s25 = int_to_ptr.vmem [resolvable:$true] %s172_s25 }
  0x1b   : > { %s170_s26 = sshll.u32 %s168_s23, 4  ;;  %p1579_p7 = pnand %p1200_p2, %p1552_p11  ;;  %s171_s26 = int_to_ptr.hbm [resolvable:$true] %s170_s26 }
  0x1c   : > { %s161_s28 = scalar_lea.sflag [#allocation3], %s160_s10  ;;  %s1365_s29 = sshra.s32 %s171_s26, 4  ;;  %s1366_s29 = int_to_ptr.hbm [resolvable:$true] %s1365_s29 }
  0x1d   : > { %s1367_s30 = scalar_lea.hbm %s1366_s29, 8  ;;  %p1369_p9 = pneg %p1579_p7 }
  0x1e   : > { %p1368_p8 = scmp.ne.s32.totalorder %s1366_s29, %s1367_s30  ;;  %s1372_s17 = scalar_lea.hbm %s1782_s0, 16 }
  0x1f   : > { %p1373_p11 = scmp.lt.s32.totalorder %s1366_s29, %s1782_s0  ;;  %p1374_p0 = scmp.lt.s32.totalorder %s1372_s17, %s1367_s30 }
  0x20   : > { %p1370_p10 = pnand %p1369_p9, %p1368_p8 }
  0x21   : > { %p1375_p2 = por %p1374_p0, %p1373_p11 }
  0x22   : > { %p1371_p13 = pneg %p1370_p10 }
  0x24   : > { %p1376_p5 = pnand %p1375_p2, %p1371_p13 }
  0x26   : > { %1379 = shalt.err (!%p1376_p5)
}
  0x27   : > { %1193 = dma.hbm_to_vmem [thread:$0]  (!%p1579_p7), %s171_s26, 128, %s173_s25, %s161_s28  }
  0x28   : > { %181 = sbr.rel (%p1525_p3) target bundleno = 3872 (0xf20), region = 32  ;;  %s1596_s10 = sand.u32 (!%p1525_p3), 1, %s1457_s13  }
  0x29   : > { %s1137_s21 = sshll.u32 (!%p1525_p3), %s1596_s10, 3  ;;  %s184_s22 = scalar_lea.sflag (!%p1525_p3), [#allocation3], %s1596_s10 }
  0x2a   : > { %s187_s23 = scalar_lea.vmem (!%p1525_p3), [#allocation2], %s1137_s21 }
  0x2d   : > { %1440 = dma.done.wait (%p1558_p12), %s184_s22, 128  }
  0x2e   : > { %1442 = vsyncadd (%p1558_p12), %s184_s22, 4294967168 }
  0x2f   : > { %1444 = dma.done.wait (%p41_p1), [#allocation6], 6528  }
  0x30   : > { %1446 = vsyncadd (%p41_p1), [#allocation6], 4294960768  ;;  %vm258_vm0 = vcmask 261120   ;;  %v1610_v0 = vld [vmem:[%s187_s23] sm:$0xff]  ;;  %v1471_v2 = vmov 32.0   ;;  %v232_v16 = vld [vmem:[#allocation5 + $0x8] sm:$0xff] }
  0x31   : > { %v259_v1 = vsel %vm258_vm0, %v1610_v0, 0.0  ;;  %1279 = vrcp.f32 %v1471_v2  ;;  %v234_v14 = vld [vmem:[#allocation5 + $0x18] sm:$0xff]  ;;  %v233_v15 = vld [vmem:[#allocation5 + $0x10] sm:$0xff]  ;;  %v231_v17 = vld [vmem:[#allocation5] sm:$0xff]  ;;  %s1472_s20 = smov 32   ;;  %s1473_s9 = smov 96  }
  0x32   : > { %260 = vadd.xlane.f32.xlu0 %v259_v1  ;;  %307 = vmatpush.msra.mxu0 %v234_v14  ;;  %v225_v18 = vld [vmem:[#allocation7 + $0x18] sm:$0xff]  ;;  %v223_v19 = vld [vmem:[#allocation7 + $0x8] sm:$0xff]  ;;  %v224_v23 = vld [vmem:[#allocation7 + $0x10] sm:$0xff]  ;;  %s1474_s24 = smov 64   ;;  %vm443_vm5 = vcmask 1043456   ;;  %vm439_vm9 = vcmask 31744  }
  0x33   : > { %325 = vrot.lane.b32.xlu1 %v225_v18, %s1472_s20  ;;  %321 = vrot.lane.b32.xlu2 %v223_v19, %s1472_s20  ;;  %v222_v24 = vld [vmem:[#allocation7] sm:$0xff]  ;;  %v1265_v31 = vld [vmem:[#allocation5 + $0xa0] ss:$0 sm:$0xff]  ;;  %v1266_v34 = vld [vmem:[#allocation5 + $0xa1] ss:$0 sm:$0xff]  ;;  %s1168_s25 = sshll.u32 %s1520_s19, 3 }
  0x34   : > { %308 = vmatpush.msra.mxu0 %v233_v15  ;;  %v1660_v60 = vld [vmem:[#allocation7 + $0x40] sm:$0xf]  ;;  %s1035_s28 = scalar_lea.hbm %s1785_s3, %s1168_s25  ;;  %s220_s29 = scalar_lea.vmem [#allocation8], %s1137_s21 }
  0x35   : > { %1148 = vmatpush.msk.msra.mxu3 %vm443_vm5, %v1660_v60  ;;  %s1037_s30 = sshll.u32 %s220_s29, 4  ;;  %s1039_s5 = sshll.u32 %s1035_s28, 4  ;;  %s1038_s30 = int_to_ptr.vmem [resolvable:$true] %s1037_s30  ;;  %s1040_s5 = int_to_ptr.hbm [resolvable:$true] %s1039_s5 }
  0x36   : > { %309 = vmatpush.msra.mxu0 %v232_v16  ;;  %s1025_s6 = scalar_lea.sflag [#allocation4], %s1596_s10  ;;  %s1409_s19 = sshra.s32 %s1040_s5, 4  ;;  %s1410_s19 = int_to_ptr.hbm [resolvable:$true] %s1409_s19 }
  0x37   : > { %v1280_v3 = vpop.eup %1279  ;;  %s1411_s17 = scalar_lea.hbm %s1410_s19, 8  ;;  %s1415_s21 = scalar_lea.hbm %s1785_s3, 16 }
  0x38   : > { %v263_v4 = vmul.f32 32.0, %v1280_v3  ;;  %vm267_vm1 = vweird.f32 %v1280_v3  ;;  %310 = vmatpush.msra.mxu0 %v231_v17  ;;  %p1412_p1 = scmp.ne.s32.totalorder %s1410_s19, %s1411_s17  ;;  %p1416_p12 = scmp.lt.s32.totalorder %s1410_s19, %s1785_s3 }
  0x39   : > { %p1417_p7 = scmp.lt.s32.totalorder %s1415_s21, %s1411_s17 }
  0x3a   : > { %v264_v5 = vsub.f32 1.0, %v263_v4  ;;  %p1413_p3 = pnand %p1412_p1, %p1565_p4 }
  0x3b   : > { %323 = vrot.lane.b32.xlu1 %v224_v23, %s1472_s20  ;;  %319 = vrot.lane.b32.xlu2 %v222_v24, %s1472_s20  ;;  %p1418_p8 = por %p1417_p7, %p1416_p12 }
  0x3c   : > { %v265_v6 = vmul.f32 %v1280_v3, %v264_v5  ;;  %p1414_p5 = pneg %p1413_p3 }
  0x3e   : > { %v266_v7 = vadd.f32 %v1280_v3, %v265_v6  ;;  %p1419_p9 = pnand %p1418_p8, %p1414_p5 }
  0x40   : > { %v1614_v8 = vsel %vm267_vm1, %v1280_v3, %v266_v7  ;;  %v1665_v7 = vld [vmem:[#allocation7 + $0x38] sm:$0xff] }
  0x41   : > { %416 = vmatpush.msra.mxu2 %v1665_v7 }
  0x8d   : > { %v1623_v38 = vpop.permute.xlu2 %321 }
  0x95   : > { %v1633_v44 = vpop.permute.xlu2 %319 }
  0xa5   : > { %v261_v9 = vpop.xlane.xlu0 %260  ;;  %v1621_v37 = vpop.permute.xlu1 %325 }
  0xa6   : > { %v269_v10 = vmul.f32 %v1614_v8, %v261_v9  ;;  %v1667_v9 = vld [vmem:[#allocation7 + $0x30] sm:$0xff] }
  0xa7   : > { %417 = vmatpush.msra.mxu2 %v1667_v9 }
  0xa8   : > { %v270_v11 = vsub.f32 %v1610_v0, %v269_v10  ;;  %v1670_v10 = vld [vmem:[#allocation7 + $0x28] sm:$0xff] }
  0xa9   : > { %418 = vmatpush.msra.mxu2 %v1670_v10 }
  0xaa   : > { %v271_v12 = vmul.f32 %v270_v11, %v270_v11 }
  0xac   : > { %v272_v13 = vsel %vm258_vm0, %v271_v12, 0.0 }
  0xad   : > { %273 = vadd.xlane.f32.xlu0 %v272_v13  ;;  %v1625_v39 = vpop.permute.xlu1 %323 }
 0x120   : > { %v274_v20 = vpop.xlane.xlu0 %273 }
 0x121   : > { %v275_v21 = vmul.f32 %v274_v20, %v1614_v8 }
 0x123   : > { %v276_v22 = vadd.f32 1e-05, %v275_v21 }
 0x125   : > { %1281 = vrsqrt.f32 %v276_v22  ;;  %vm283_vm3 = vweird.f32 %v276_v22 }
 0x12b   : > { %v1282_v25 = vpop.eup %1281 }
 0x12c   : > { %v278_v26 = vmul.f32 %v1282_v25, %v276_v22  ;;  %vm284_vm2 = vweird.f32 %v1282_v25 }
 0x12d   : > { %vm285_vm4 = vmor %vm283_vm3, %vm284_vm2 }
 0x12e   : > { %v279_v27 = vmul.f32 %v1282_v25, %v278_v26 }
 0x130   : > { %v280_v28 = vmul.f32 0.5, %v279_v27  ;;  %v238_v27 = vld [vmem:[#allocation5 + $0x38] sm:$0xff] }
 0x131   : > { %523 = vmatpush.msrb.mxu0 %v238_v27 }
 0x132   : > { %v281_v29 = vsub.f32 1.5, %v280_v28  ;;  %v237_v28 = vld [vmem:[#allocation5 + $0x30] sm:$0xff] }
 0x133   : > { %524 = vmatpush.msrb.mxu0 %v237_v28 }
 0x134   : > { %v282_v30 = vmul.f32 %v1282_v25, %v281_v29  ;;  %v236_v29 = vld [vmem:[#allocation5 + $0x28] sm:$0xff] }
 0x135   : > { %525 = vmatpush.msrb.mxu0 %v236_v29  ;;  %v243_v29 = vld [vmem:[#allocation5 + $0x60] sm:$0xff] }
 0x136   : > { %v286_v32 = vsel %vm285_vm4, %v1282_v25, %v282_v30  ;;  %v235_v30 = vld [vmem:[#allocation5 + $0x20] sm:$0xff]  ;;  %vm623_vm4 = vcmask 523264  }
 0x137   : > { %v287_v33 = vmul.f32 %v286_v32, %v270_v11  ;;  %v1673_v11 = vld [vmem:[#allocation7 + $0x20] sm:$0xff]  ;;  %526 = vmatpush.msrb.mxu0 %v235_v30 }
 0x138   : > { %419 = vmatpush.msra.mxu2 %v1673_v11 }
 0x139   : > { %v289_v35 = vmul.f32 %v1265_v31, %v287_v33 }
 0x13b   : > { %v291_v36 = vadd.f32 %v1266_v34, %v289_v35  ;;  %v1267_v34 = vld [vmem:[#allocation5 + $0xa2] ss:$0 sm:$0xff] }
 0x13d   : > { %1141 = vmatmul.msk.f32.vlgmr.msra.gmra.mxu0 %vm258_vm0, %v291_v36 }
 0x1ba   : > { %v312_v40 = vpop.f32.mrf.mxu0 }
 0x1bb   : > { %v334_v41 = vmul.f32 %v1621_v37, %v312_v40  ;;  %v333_v42 = vmul.f32 %v1625_v39, %v312_v40  ;;  %v332_v43 = vmul.f32 %v1623_v38, %v312_v40  ;;  %v331_v45 = vmul.f32 %v1633_v44, %v312_v40 }
 0x1bd   : > { %361 = vrot.lane.b32.xlu0 %v334_v41, %s1473_s9  ;;  %359 = vrot.lane.b32.xlu1 %v333_v42, %s1473_s9 }
 0x1be   : > { %357 = vrot.lane.b32.xlu2 %v332_v43, %s1473_s9 }
 0x1c5   : > { %339 = vrot.lane.b32.xlu0 %v224_v23, %s1474_s24  ;;  %355 = vrot.lane.b32.xlu1 %v331_v45, %s1473_s9 }
 0x1cd   : > { %335 = vrot.lane.b32.xlu0 %v222_v24, %s1474_s24  ;;  %341 = vrot.lane.b32.xlu1 %v225_v18, %s1474_s24 }
 0x1d5   : > { %337 = vrot.lane.b32.xlu1 %v223_v19, %s1474_s24 }
 0x218   : > { %v358_v48 = vpop.permute.xlu2 %357 }
 0x22f   : > { %v362_v46 = vpop.permute.xlu0 %361  ;;  %v360_v47 = vpop.permute.xlu1 %359 }
 0x230   : > { %1142 = vmatpush.xpose.msk.msra.mxu1 %vm258_vm0, %v362_v46 }
 0x234   : > { %1143 = vmatpush.xpose.msk.msra.mxu1 %vm258_vm0, %v360_v47 }
 0x237   : > { %v356_v49 = vpop.permute.xlu1 %355  ;;  %v1644_v50 = vpop.permute.xlu0 %339 }
 0x238   : > { %1144 = vmatpush.xpose.msk.msra.mxu1 %vm258_vm0, %v358_v48  ;;  %v349_v52 = vmul.f32 %v1644_v50, %v312_v40  ;;  %v242_v48 = vld [vmem:[#allocation5 + $0x58] sm:$0xff] }
 0x239   : > { %574 = vmatpush.msrb.mxu2 %v242_v48 }
 0x23c   : > { %1145 = vmatpush.xpose.msk.msra.mxu1 %vm258_vm0, %v356_v49  ;;  %v241_v49 = vld [vmem:[#allocation5 + $0x50] sm:$0xff] }
 0x23d   : > { %575 = vmatpush.msrb.mxu2 %v241_v49 }
 0x23f   : > { %1146 = vmatmul.msk.f32.vlgmr.msra.gmra.mxu1 %vm258_vm0, %v312_v40  ;;  %v1648_v51 = vpop.permute.xlu1 %341  ;;  %v1653_v55 = vpop.permute.xlu0 %335 }
 0x240   : > { %v350_v53 = vmul.f32 %v1648_v51, %v312_v40  ;;  %v347_v57 = vmul.f32 %v1653_v55, %v312_v40 }
 0x242   : > { %v1245_v54 = vpack.i.bf16 %v349_v52, %v350_v53  ;;  %v240_v52 = vld [vmem:[#allocation5 + $0x48] sm:$0xff] }
 0x243   : > { %576 = vmatpush.msrb.mxu2 %v240_v52 }
 0x244   : > { %1246 = vrot.lane.b32.xlu1 %v1245_v54, %s1474_s24 }
 0x247   : > { %v1655_v56 = vpop.permute.xlu1 %337 }
 0x248   : > { %v348_v58 = vmul.f32 %v1655_v56, %v312_v40 }
 0x24a   : > { %v1250_v59 = vpack.i.bf16 %v347_v57, %v348_v58 }
 0x24c   : > { %1251 = vrot.lane.b32.xlu0 %v1250_v59, %s1474_s24 }
 0x2b6   : > { %v1247_v61 = vpop.permute.xlu1 %1246 }
 0x2b7   : > { %v1248_v62 = vunpack.i.l.bf16 %v1247_v61  ;;  %v1249_v63 = vunpack.i.h.bf16 %v1247_v61 }
 0x2b9   : > { %499 = vmatpush.msrb.mxu3 %v1248_v62 }
 0x2bb   : > { %500 = vmatpush.msrb.mxu3 %v1249_v63 }
 0x2bc   : > { %v391_v1 = vpop.f32.mrf.mxu1 }
 0x2bd   : > { %v394_v2 = vmul.f32 0.35355338, %v391_v1 }
 0x2be   : > { %v1252_v3 = vpop.permute.xlu0 %1251 }
 0x2bf   : > { %v395_v4 = vsel %vm258_vm0, %v394_v2, -inf  ;;  %v1253_v5 = vunpack.i.l.bf16 %v1252_v3  ;;  %v1254_v6 = vunpack.i.h.bf16 %v1252_v3 }
 0x2c0   : > { %396 = vmax.xlane.f32.xlu2 %v395_v4 }
 0x2c1   : > { %501 = vmatpush.msrb.mxu3 %v1253_v5  ;;  %v1269_v5 = vld [vmem:[#allocation5 + $0xa4] ss:$0 sm:$0xff] }
 0x2c3   : > { %502 = vmatpush.msrb.mxu3 %v1254_v6 }
 0x333   : > { %v397_v12 = vpop.xlane.xlu2 %396 }
 0x334   : > { %v398_v13 = vsub.f32 %v394_v2, %v397_v12  ;;  %v1268_v2 = vld [vmem:[#allocation5 + $0xa3] ss:$0 sm:$0xff] }
 0x336   : > { %v399_v14 = vmul.f32 1.442695, %v398_v13 }
 0x338   : > { %1283 = vpow2.f32 %v399_v14 }
 0x33e   : > { %v1284_v15 = vpop.eup %1283 }
 0x33f   : > { %1147 = vmatmul.msk.f32.vlgmr.msra.gmra.mxu2 %vm258_vm0, %v1284_v15 }
 0x3c2   : > { %v421_v16 = vpop.f32.mrf.mxu2 }
 0x3c3   : > { %1285 = vrcp.f32 %v421_v16  ;;  %v435_v20 = vand.u32 2147483648, %v421_v16  ;;  %v433_v22 = vand.u32 2147483647, %v421_v16  ;;  %vm429_vm7 = vweird.f32 %v421_v16 }
 0x3c5   : > { %v436_v24 = vor.u32 1.1754944e-38, %v435_v20  ;;  %vm434_vm10 = vcmp.eq.f32.partialorder %v433_v22, 8.507059e+37 }
 0x3c9   : > { %v1286_v17 = vpop.eup %1285 }
 0x3ca   : > { %v425_v18 = vmul.f32 %v1286_v17, %v421_v16  ;;  %vm430_vm6 = vweird.f32 %v1286_v17  ;;  %v250_v16 = vld [vmem:[#allocation5 + $0x98] sm:$0xff] }
 0x3cb   : > { %vm431_vm8 = vmor %vm429_vm7, %vm430_vm6 }
 0x3cc   : > { %v426_v19 = vsub.f32 1.0, %v425_v18  ;;  %v248_v18 = vld [vmem:[#allocation5 + $0x88] sm:$0xff] }
 0x3ce   : > { %v427_v21 = vmul.f32 %v1286_v17, %v426_v19  ;;  %v247_v19 = vld [vmem:[#allocation5 + $0x80] sm:$0xff] }
 0x3d0   : > { %v428_v23 = vadd.f32 %v1286_v17, %v427_v21  ;;  %v246_v21 = vld [vmem:[#allocation5 + $0x78] sm:$0xff] }
 0x3d2   : > { %v432_v25 = vsel %vm431_vm8, %v1286_v17, %v428_v23  ;;  %v249_v17 = vld [vmem:[#allocation5 + $0x90] sm:$0xff] }
 0x3d3   : > { %v437_v26 = vsel %vm434_vm10, %v436_v24, %v432_v25  ;;  %v245_v23 = vld [vmem:[#allocation5 + $0x70] sm:$0xff] }
 0x3d4   : > { %1149 = vmatmul.msk.f32.vlgmr.msra.gmra.mxu3 %vm439_vm9, %v437_v26  ;;  %v244_v26 = vld [vmem:[#allocation5 + $0x68] sm:$0xff] }
 0x3d5   : > { %635 = vmatpush.msra.mxu3 %v250_v16 }
 0x3d7   : > { %636 = vmatpush.msra.mxu3 %v249_v17 }
 0x3d9   : > { %637 = vmatpush.msra.mxu3 %v248_v18 }
 0x3db   : > { %638 = vmatpush.msra.mxu3 %v247_v19 }
 0x3dd   : > { %639 = vmatpush.msra.mxu3 %v246_v21 }
 0x3df   : > { %640 = vmatpush.msra.mxu3 %v245_v23 }
 0x3e1   : > { %641 = vmatpush.msra.mxu3 %v244_v26 }
 0x3e3   : > { %642 = vmatpush.msra.mxu3 %v243_v29 }
 0x457   : > { %v464_v31 = vpop.f32.mrf.mxu3 }
 0x458   : > { %v467_v32 = vmul.f32 %v1284_v15, %v464_v31 }
 0x45a   : > { %1150 = vmatmul.msk.f32.vlgmr.msrb.gmra.mxu3 %vm258_vm0, %v467_v32 }
 0x4dd   : > { %v504_v33 = vpop.f32.mrf.mxu3 }
 0x4de   : > { %1151 = vmatmul.msk.f32.vlgmr.msrb.gmra.mxu0 %vm258_vm0, %v504_v33 }
 0x55b   : > { %v528_v35 = vpop.f32.mrf.mxu0 }
 0x55c   : > { %v529_v36 = vadd.f32 %v1267_v34, %v528_v35 }
 0x55e   : > { %v1682_v40 = vadd.f32 %v529_v36, %v1610_v0  ;;  %v239_v0 = vld [vmem:[#allocation5 + $0x40] sm:$0xff] }
 0x55f   : > { %577 = vmatpush.msrb.mxu2 %v239_v0 }
 0x560   : > { %v532_v41 = vsel %vm258_vm0, %v1682_v40, 0.0 }
 0x561   : > { %533 = vadd.xlane.f32.xlu1 %v532_v41  ;;  %797 = vmatpush.msra.mxu2 %v1665_v7 }
 0x563   : > { %798 = vmatpush.msra.mxu2 %v1667_v9  ;;  %v1270_v9 = vld [vmem:[#allocation5 + $0xa5] ss:$0 sm:$0xff] }
 0x565   : > { %799 = vmatpush.msra.mxu2 %v1670_v10 }
 0x567   : > { %800 = vmatpush.msra.mxu2 %v1673_v11 }
 0x5d4   : > { %v534_v42 = vpop.xlane.xlu1 %533 }
 0x5d5   : > { %v535_v43 = vmul.f32 %v534_v42, %v1614_v8 }
 0x5d7   : > { %v536_v45 = vsub.f32 %v1682_v40, %v535_v43 }
 0x5d9   : > { %v537_v46 = vmul.f32 %v536_v45, %v536_v45 }
 0x5db   : > { %v538_v47 = vsel %vm258_vm0, %v537_v46, 0.0 }
 0x5dc   : > { %539 = vadd.xlane.f32.xlu0 %v538_v47 }
 0x64f   : > { %v540_v53 = vpop.xlane.xlu0 %539 }
 0x650   : > { %v541_v54 = vmul.f32 %v540_v53, %v1614_v8 }
 0x652   : > { %v542_v57 = vadd.f32 1e-05, %v541_v54 }
 0x654   : > { %1287 = vrsqrt.f32 %v542_v57  ;;  %vm549_vm12 = vweird.f32 %v542_v57 }
 0x65a   : > { %v1288_v58 = vpop.eup %1287 }
 0x65b   : > { %v544_v59 = vmul.f32 %v1288_v58, %v542_v57  ;;  %vm550_vm11 = vweird.f32 %v1288_v58  ;;  %v1475_v57 = vmov 1.0  }
 0x65c   : > { %vm551_vm13 = vmor %vm549_vm12, %vm550_vm11 }
 0x65d   : > { %v545_v61 = vmul.f32 %v1288_v58, %v544_v59 }
 0x65f   : > { %v546_v62 = vmul.f32 0.5, %v545_v61 }
 0x661   : > { %v547_v63 = vsub.f32 1.5, %v546_v62 }
 0x663   : > { %v548_v1 = vmul.f32 %v1288_v58, %v547_v63 }
 0x665   : > { %v552_v3 = vsel %vm551_vm13, %v1288_v58, %v548_v1  ;;  %v1271_v1 = vld [vmem:[#allocation5 + $0xa6] ss:$0 sm:$0xff] }
 0x666   : > { %v553_v4 = vmul.f32 %v552_v3, %v536_v45 }
 0x668   : > { %v555_v6 = vmul.f32 %v1268_v2, %v553_v4 }
 0x66a   : > { %v557_v7 = vadd.f32 %v1269_v5, %v555_v6 }
 0x66c   : > { %1152 = vmatmul.msk.f32.vlgmr.msrb.gmra.mxu2 %vm258_vm0, %v557_v7 }
 0x6ef   : > { %v579_v10 = vpop.f32.mrf.mxu2 }
 0x6f0   : > { %v580_v11 = vadd.f32 %v1270_v9, %v579_v10 }
 0x6f2   : > { %v583_v12 = vmul.f32 0.70710677, %v580_v11  ;;  %v582_v61 = vmul.f32 0.5, %v580_v11 }
 0x6f4   : > { %v586_v13 = vand.u32 2147483647, %v583_v12  ;;  %vm584_vm3 = vcmp.lt.f32.partialorder %v583_v12, 0.0  ;;  %v651_v12 = vld [vmem:[#allocation5 + $0xc0] sm:$0xff] }
 0x6f5   : > { %v585_v58 = vsel %vm584_vm3, -1.0, %v1475_v57  ;;  %716 = vmatpush.msra.mxu0 %v651_v12  ;;  %v652_v12 = vld [vmem:[#allocation5 + $0xc8] sm:$0xff] }
 0x6f6   : > { %v587_v14 = vmul.f32 0.3275911, %v586_v13  ;;  %v613_v34 = vsub.f32 0.0, %v586_v13 }
 0x6f8   : > { %v588_v15 = vadd.f32 1.0, %v587_v14  ;;  %v614_v41 = vmul.f32 %v613_v34, %v586_v13  ;;  %v650_v13 = vld [vmem:[#allocation5 + $0xb8] sm:$0xff]  ;;  %v649_v14 = vld [vmem:[#allocation5 + $0xb0] sm:$0xff] }
 0x6f9   : > { %717 = vmatpush.msra.mxu0 %v650_v13 }
 0x6fa   : > { %1289 = vrcp.f32 %v588_v15  ;;  %v600_v25 = vand.u32 2147483648, %v588_v15  ;;  %v598_v28 = vand.u32 2147483647, %v588_v15  ;;  %vm594_vm15 = vweird.f32 %v588_v15 }
 0x6fb   : > { %v615_v45 = vmul.f32 1.442695, %v614_v41  ;;  %718 = vmatpush.msra.mxu0 %v649_v14 }
 0x6fc   : > { %v601_v31 = vor.u32 1.1754944e-38, %v600_v25  ;;  %vm599_vm2 = vcmp.eq.f32.partialorder %v598_v28, 8.507059e+37 }
 0x6fd   : > { %1291 = vpow2.f32 %v615_v45 }
 0x700   : > { %v1290_v20 = vpop.eup %1289 }
 0x701   : > { %v590_v22 = vmul.f32 %v1290_v20, %v588_v15  ;;  %vm595_vm14 = vweird.f32 %v1290_v20 }
 0x702   : > { %vm596_vm1 = vmor %vm594_vm15, %vm595_vm14 }
 0x703   : > { %v591_v24 = vsub.f32 1.0, %v590_v22  ;;  %v1292_v0 = vpop.eup %1291 }
 0x705   : > { %v592_v27 = vmul.f32 %v1290_v20, %v591_v24  ;;  %v1272_v24 = vld [vmem:[#allocation5 + $0x148] ss:$0 sm:$0xff] }
 0x707   : > { %v593_v30 = vadd.f32 %v1290_v20, %v592_v27  ;;  %v1273_v27 = vld [vmem:[#allocation5 + $0x149] ss:$0 sm:$0xff] }
 0x709   : > { %v597_v32 = vsel %vm596_vm1, %v1290_v20, %v593_v30 }
 0x70a   : > { %v602_v33 = vsel %vm599_vm2, %v601_v31, %v597_v32 }
 0x70b   : > { %v604_v35 = vmul.f32 1.0614054, %v602_v33 }
 0x70d   : > { %v605_v36 = vadd.f32 -1.4531521, %v604_v35 }
 0x70f   : > { %v606_v42 = vmul.f32 %v605_v36, %v602_v33 }
 0x711   : > { %v607_v43 = vadd.f32 1.4214138, %v606_v42 }
 0x713   : > { %v608_v46 = vmul.f32 %v607_v43, %v602_v33 }
 0x715   : > { %v609_v47 = vadd.f32 -0.28449672, %v608_v46 }
 0x717   : > { %v610_v48 = vmul.f32 %v609_v47, %v602_v33 }
 0x719   : > { %v611_v49 = vadd.f32 0.2548296, %v610_v48 }
 0x71b   : > { %v612_v52 = vmul.f32 %v611_v49, %v602_v33 }
 0x71d   : > { %v617_v53 = vmul.f32 %v1292_v0, %v612_v52 }
 0x71f   : > { %v618_v54 = vsub.f32 1.0, %v617_v53 }
 0x721   : > { %v619_v59 = vmul.f32 %v618_v54, %v585_v58 }
 0x723   : > { %v620_v62 = vadd.f32 1.0, %v619_v59 }
 0x725   : > { %v621_v63 = vmul.f32 %v620_v62, %v582_v61 }
 0x727   : > { %1153 = vmatmul.msk.f32.vlgmr.msra.gmra.mxu3 %vm623_vm4, %v621_v63 }
 0x7aa   : > { %v644_v2 = vpop.f32.mrf.mxu3 }
 0x7ab   : > { %v645_v3 = vadd.f32 %v1271_v1, %v644_v2 }
 0x7ad   : > { %v1698_v4 = vadd.f32 %v645_v3, %v1682_v40  ;;  %v648_v40 = vld [vmem:[#allocation5 + $0xa8] sm:$0xff] }
 0x7ae   : > { %719 = vmatpush.msra.mxu0 %v648_v40 }
 0x7af   : > { %v675_v5 = vsel %vm258_vm0, %v1698_v4, 0.0 }
 0x7b0   : > { %676 = vadd.xlane.f32.xlu2 %v675_v5  ;;  %1161 = vmatpush.msk.msrb.mxu0 %vm443_vm5, %v1660_v60 }
 0x823   : > { %v677_v6 = vpop.xlane.xlu2 %676 }
 0x824   : > { %v678_v7 = vmul.f32 %v677_v6, %v1614_v8 }
 0x826   : > { %v679_v9 = vsub.f32 %v1698_v4, %v678_v7 }
 0x828   : > { %v680_v10 = vmul.f32 %v679_v9, %v679_v9 }
 0x82a   : > { %v681_v11 = vsel %vm258_vm0, %v680_v10, 0.0  ;;  %v654_v10 = vld [vmem:[#allocation5 + $0xd8] sm:$0xff] }
 0x82b   : > { %682 = vadd.xlane.f32.xlu2 %v681_v11  ;;  %v653_v11 = vld [vmem:[#allocation5 + $0xd0] sm:$0xff] }
 0x89e   : > { %v683_v15 = vpop.xlane.xlu2 %682 }
 0x89f   : > { %v684_v16 = vmul.f32 %v683_v15, %v1614_v8  ;;  %v1274_v15 = vld [vmem:[#allocation5 + $0x14a] ss:$0 sm:$0xff] }
 0x8a1   : > { %v685_v17 = vadd.f32 1e-05, %v684_v16 }
 0x8a3   : > { %1293 = vrsqrt.f32 %v685_v17  ;;  %vm692_vm7 = vweird.f32 %v685_v17 }
 0x8a9   : > { %v1294_v18 = vpop.eup %1293 }
 0x8aa   : > { %v687_v19 = vmul.f32 %v1294_v18, %v685_v17  ;;  %vm693_vm6 = vweird.f32 %v1294_v18 }
 0x8ab   : > { %vm694_vm8 = vmor %vm692_vm7, %vm693_vm6 }
 0x8ac   : > { %v688_v20 = vmul.f32 %v1294_v18, %v687_v19 }
 0x8ae   : > { %v689_v21 = vmul.f32 0.5, %v688_v20 }
 0x8b0   : > { %v690_v22 = vsub.f32 1.5, %v689_v21 }
 0x8b2   : > { %v691_v23 = vmul.f32 %v1294_v18, %v690_v22 }
 0x8b4   : > { %v695_v25 = vsel %vm694_vm8, %v1294_v18, %v691_v23 }
 0x8b5   : > { %v696_v26 = vmul.f32 %v695_v25, %v679_v9  ;;  %v655_v9 = vld [vmem:[#allocation5 + $0xe0] sm:$0xff] }
 0x8b6   : > { %899 = vmatpush.msrb.mxu3 %v655_v9  ;;  %v659_v25 = vld [vmem:[#allocation5 + $0x100] sm:$0xff] }
 0x8b7   : > { %v698_v28 = vmul.f32 %v1272_v24, %v696_v26  ;;  %v658_v26 = vld [vmem:[#allocation5 + $0xf8] sm:$0xff] }
 0x8b8   : > { %900 = vmatpush.msrb.mxu3 %v654_v10 }
 0x8b9   : > { %v700_v60 = vadd.f32 %v1273_v27, %v698_v28  ;;  %v657_v27 = vld [vmem:[#allocation5 + $0xf0] sm:$0xff] }
 0x8ba   : > { %901 = vmatpush.msrb.mxu3 %v653_v11 }
 0x8bb   : > { %1154 = vmatmul.msk.f32.vlgmr.msra.gmra.mxu0 %vm258_vm0, %v700_v60 }
 0x8bc   : > { %902 = vmatpush.msrb.mxu3 %v652_v12  ;;  %950 = vmatpush.msra.mxu0 %v659_v25 }
 0x8be   : > { %951 = vmatpush.msra.mxu0 %v658_v26 }
 0x8c0   : > { %952 = vmatpush.msra.mxu0 %v657_v27  ;;  %v1278_v27 = vld [vmem:[#allocation5 + $0x14e] ss:$0 sm:$0xff] }
 0x938   : > { %v721_v29 = vpop.f32.mrf.mxu0 }
 0x939   : > { %v727_v30 = vmul.f32 %v721_v29, %v1621_v37  ;;  %v726_v31 = vmul.f32 %v721_v29, %v1625_v39  ;;  %v725_v32 = vmul.f32 %v721_v29, %v1623_v38  ;;  %v728_v33 = vmul.f32 %v721_v29, %v1653_v55 }
 0x93a   : > { %v729_v34 = vmul.f32 %v721_v29, %v1655_v56  ;;  %v730_v35 = vmul.f32 %v721_v29, %v1644_v50  ;;  %v731_v36 = vmul.f32 %v721_v29, %v1648_v51  ;;  %v724_v37 = vmul.f32 %v721_v29, %v1633_v44 }
 0x93b   : > { %742 = vrot.lane.b32.xlu2 %v727_v30, %s1473_s9  ;;  %740 = vrot.lane.b32.xlu1 %v726_v31, %s1473_s9 }
 0x93c   : > { %738 = vrot.lane.b32.xlu0 %v725_v32, %s1473_s9  ;;  %v1260_v41 = vpack.i.bf16 %v728_v33, %v729_v34  ;;  %v1255_v39 = vpack.i.bf16 %v730_v35, %v731_v36  ;;  %v1275_v36 = vld [vmem:[#allocation5 + $0x14b] ss:$0 sm:$0xff] }
 0x943   : > { %1261 = vrot.lane.b32.xlu1 %v1260_v41, %s1474_s24  ;;  %736 = vrot.lane.b32.xlu2 %v724_v37, %s1473_s9 }
 0x944   : > { %1256 = vrot.lane.b32.xlu0 %v1255_v39, %s1474_s24  ;;  %v1276_v39 = vld [vmem:[#allocation5 + $0x14c] ss:$0 sm:$0xff] }
 0x995   : > { %v743_v38 = vpop.permute.xlu2 %742 }
 0x996   : > { %1155 = vmatpush.xpose.msk.msrb.mxu1 %vm258_vm0, %v743_v38 }
 0x99d   : > { %v737_v50 = vpop.permute.xlu2 %736 }
 0x9ad   : > { %v741_v55 = vpop.permute.xlu1 %740 }
 0x9ae   : > { %v739_v42 = vpop.permute.xlu0 %738  ;;  %1156 = vmatpush.xpose.msk.msrb.mxu1 %vm258_vm0, %v741_v55 }
 0x9b2   : > { %1157 = vmatpush.xpose.msk.msrb.mxu1 %vm258_vm0, %v739_v42 }
 0x9b5   : > { %v1262_v56 = vpop.permute.xlu1 %1261 }
 0x9b6   : > { %v1257_v51 = vpop.permute.xlu0 %1256  ;;  %1158 = vmatpush.xpose.msk.msrb.mxu1 %vm258_vm0, %v737_v50  ;;  %v1263_v45 = vunpack.i.l.bf16 %v1262_v56  ;;  %v1264_v46 = vunpack.i.h.bf16 %v1262_v56 }
 0x9b7   : > { %v1258_v44 = vunpack.i.l.bf16 %v1257_v51  ;;  %v1259_v43 = vunpack.i.h.bf16 %v1257_v51 }
 0x9b9   : > { %875 = vmatpush.msrb.mxu2 %v1258_v44  ;;  %1159 = vmatmul.msk.f32.vlgmr.msrb.gmra.mxu1 %vm258_vm0, %v721_v29 }
 0x9bb   : > { %876 = vmatpush.msrb.mxu2 %v1259_v43 }
 0x9bd   : > { %877 = vmatpush.msrb.mxu2 %v1263_v45  ;;  %v667_v45 = vld [vmem:[#allocation5 + $0x140] sm:$0xff] }
 0x9be   : > { %1010 = vmatpush.msra.mxu1 %v667_v45 }
 0x9bf   : > { %878 = vmatpush.msrb.mxu2 %v1264_v46  ;;  %v666_v46 = vld [vmem:[#allocation5 + $0x138] sm:$0xff] }
 0x9c0   : > { %1011 = vmatpush.msra.mxu1 %v666_v46 }
 0xa36   : > { %v772_v47 = vpop.f32.mrf.mxu1 }
 0xa37   : > { %v775_v48 = vmul.f32 0.35355338, %v772_v47  ;;  %v665_v47 = vld [vmem:[#allocation5 + $0x130] sm:$0xff] }
 0xa38   : > { %1012 = vmatpush.msra.mxu1 %v665_v47 }
 0xa39   : > { %v776_v49 = vsel %vm258_vm0, %v775_v48, -inf }
 0xa3a   : > { %777 = vmax.xlane.f32.xlu2 %v776_v49 }
 0xaad   : > { %v778_v52 = vpop.xlane.xlu2 %777 }
 0xaae   : > { %v779_v0 = vsub.f32 %v775_v48, %v778_v52  ;;  %v664_v48 = vld [vmem:[#allocation5 + $0x128] sm:$0xff]  ;;  %v663_v52 = vld [vmem:[#allocation5 + $0x120] sm:$0xff] }
 0xaaf   : > { %1013 = vmatpush.msra.mxu1 %v664_v48 }
 0xab0   : > { %v780_v53 = vmul.f32 1.442695, %v779_v0 }
 0xab1   : > { %1014 = vmatpush.msra.mxu1 %v663_v52 }
 0xab2   : > { %1295 = vpow2.f32 %v780_v53  ;;  %v662_v53 = vld [vmem:[#allocation5 + $0x118] sm:$0xff] }
 0xab3   : > { %1015 = vmatpush.msra.mxu1 %v662_v53 }
 0xab8   : > { %v1296_v54 = vpop.eup %1295 }
 0xab9   : > { %1160 = vmatmul.msk.f32.vlgmr.msra.gmra.mxu2 %vm258_vm0, %v1296_v54 }
 0xb3c   : > { %v802_v58 = vpop.f32.mrf.mxu2 }
 0xb3d   : > { %1297 = vrcp.f32 %v802_v58  ;;  %v816_v63 = vand.u32 2147483648, %v802_v58  ;;  %v814_v2 = vand.u32 2147483647, %v802_v58  ;;  %vm810_vm10 = vweird.f32 %v802_v58 }
 0xb3f   : > { %v817_v5 = vor.u32 1.1754944e-38, %v816_v63  ;;  %vm815_vm12 = vcmp.eq.f32.partialorder %v814_v2, 8.507059e+37  ;;  %v660_v63 = vld [vmem:[#allocation5 + $0x108] sm:$0xff] }
 0xb43   : > { %v1298_v59 = vpop.eup %1297 }
 0xb44   : > { %v806_v61 = vmul.f32 %v1298_v59, %v802_v58  ;;  %vm811_vm5 = vweird.f32 %v1298_v59 }
 0xb45   : > { %vm812_vm11 = vmor %vm810_vm10, %vm811_vm5 }
 0xb46   : > { %v807_v62 = vsub.f32 1.0, %v806_v61 }
 0xb48   : > { %v808_v1 = vmul.f32 %v1298_v59, %v807_v62 }
 0xb4a   : > { %v809_v3 = vadd.f32 %v1298_v59, %v808_v1 }
 0xb4c   : > { %v813_v6 = vsel %vm812_vm11, %v1298_v59, %v809_v3  ;;  %v661_v59 = vld [vmem:[#allocation5 + $0x110] sm:$0xff] }
 0xb4d   : > { %v818_v7 = vsel %vm815_vm12, %v817_v5, %v813_v6  ;;  %1016 = vmatpush.msra.mxu1 %v661_v59 }
 0xb4e   : > { %1162 = vmatmul.msk.f32.vlgmr.msrb.gmra.mxu0 %vm439_vm9, %v818_v7 }
 0xb4f   : > { %1017 = vmatpush.msra.mxu1 %v660_v63 }
 0xbcb   : > { %v840_v13 = vpop.f32.mrf.mxu0 }
 0xbcc   : > { %v843_v14 = vmul.f32 %v1296_v54, %v840_v13 }
 0xbce   : > { %1163 = vmatmul.msk.f32.vlgmr.msrb.gmra.mxu2 %vm258_vm0, %v843_v14 }
 0xc51   : > { %v880_v40 = vpop.f32.mrf.mxu2 }
 0xc52   : > { %1164 = vmatmul.msk.f32.vlgmr.msrb.gmra.mxu3 %vm258_vm0, %v880_v40 }
 0xcd5   : > { %v904_v16 = vpop.f32.mrf.mxu3 }
 0xcd6   : > { %v905_v17 = vadd.f32 %v1274_v15, %v904_v16 }
 0xcd8   : > { %v1734_v18 = vadd.f32 %v905_v17, %v1698_v4  ;;  %v656_v4 = vld [vmem:[#allocation5 + $0xe8] sm:$0xff] }
 0xcd9   : > { %953 = vmatpush.msra.mxu0 %v656_v4 }
 0xcda   : > { %v908_v19 = vsel %vm258_vm0, %v1734_v18, 0.0 }
 0xcdb   : > { %909 = vadd.xlane.f32.xlu0 %v908_v19 }
 0xd4e   : > { %v910_v20 = vpop.xlane.xlu0 %909 }
 0xd4f   : > { %v911_v21 = vmul.f32 %v910_v20, %v1614_v8 }
 0xd51   : > { %v912_v22 = vsub.f32 %v1734_v18, %v911_v21 }
 0xd53   : > { %v913_v23 = vmul.f32 %v912_v22, %v912_v22 }
 0xd55   : > { %v914_v24 = vsel %vm258_vm0, %v913_v23, 0.0 }
 0xd56   : > { %915 = vadd.xlane.f32.xlu1 %v914_v24 }
 0xdc9   : > { %v916_v28 = vpop.xlane.xlu1 %915 }
 0xdca   : > { %v917_v60 = vmul.f32 %v916_v28, %v1614_v8  ;;  %v1277_v8 = vld [vmem:[#allocation5 + $0x14d] ss:$0 sm:$0xff] }
 0xdcc   : > { %v918_v29 = vadd.f32 1e-05, %v917_v60 }
 0xdce   : > { %1299 = vrsqrt.f32 %v918_v29  ;;  %vm925_vm13 = vweird.f32 %v918_v29 }
 0xdd4   : > { %v1300_v30 = vpop.eup %1299 }
 0xdd5   : > { %v920_v31 = vmul.f32 %v1300_v30, %v918_v29  ;;  %vm926_vm9 = vweird.f32 %v1300_v30 }
 0xdd6   : > { %vm927_vm14 = vmor %vm925_vm13, %vm926_vm9 }
 0xdd7   : > { %v921_v32 = vmul.f32 %v1300_v30, %v920_v31 }
 0xdd9   : > { %v922_v33 = vmul.f32 0.5, %v921_v32 }
 0xddb   : > { %v923_v34 = vsub.f32 1.5, %v922_v33 }
 0xddd   : > { %v924_v35 = vmul.f32 %v1300_v30, %v923_v34 }
 0xddf   : > { %v928_v41 = vsel %vm927_vm14, %v1300_v30, %v924_v35 }
 0xde0   : > { %v929_v37 = vmul.f32 %v928_v41, %v912_v22 }
 0xde2   : > { %v931_v38 = vmul.f32 %v1275_v36, %v929_v37 }
 0xde4   : > { %v933_v55 = vadd.f32 %v1276_v39, %v931_v38 }
 0xde6   : > { %1165 = vmatmul.msk.f32.vlgmr.msra.gmra.mxu0 %vm258_vm0, %v933_v55 }
 0xe63   : > { %v955_v42 = vpop.f32.mrf.mxu0 }
 0xe64   : > { %v956_v50 = vadd.f32 %v1277_v8, %v955_v42 }
 0xe66   : > { %v959_v51 = vmul.f32 0.70710677, %v956_v50  ;;  %v958_v24 = vmul.f32 0.5, %v956_v50 }
 0xe68   : > { %v962_v44 = vand.u32 2147483647, %v959_v51  ;;  %vm960_vm6 = vcmp.lt.f32.partialorder %v959_v51, 0.0 }
 0xe69   : > { %v961_v22 = vsel %vm960_vm6, -1.0, %v1475_v57 }
 0xe6a   : > { %v963_v56 = vmul.f32 0.3275911, %v962_v44  ;;  %v989_v6 = vsub.f32 0.0, %v962_v44 }
 0xe6c   : > { %v964_v43 = vadd.f32 1.0, %v963_v56  ;;  %v990_v10 = vmul.f32 %v989_v6, %v962_v44 }
 0xe6e   : > { %1301 = vrcp.f32 %v964_v43  ;;  %v976_v58 = vand.u32 2147483648, %v964_v43  ;;  %v974_v62 = vand.u32 2147483647, %v964_v43  ;;  %vm970_vm1 = vweird.f32 %v964_v43 }
 0xe6f   : > { %v991_v13 = vmul.f32 1.442695, %v990_v10 }
 0xe70   : > { %v977_v2 = vor.u32 1.1754944e-38, %v976_v58  ;;  %vm975_vm3 = vcmp.eq.f32.partialorder %v974_v62, 8.507059e+37 }
 0xe71   : > { %1303 = vpow2.f32 %v991_v13 }
 0xe74   : > { %v1302_v49 = vpop.eup %1301 }
 0xe75   : > { %v966_v0 = vmul.f32 %v1302_v49, %v964_v43  ;;  %vm971_vm15 = vweird.f32 %v1302_v49 }
 0xe76   : > { %vm972_vm2 = vmor %vm970_vm1, %vm971_vm15 }
 0xe77   : > { %v967_v54 = vsub.f32 1.0, %v966_v0  ;;  %v1304_v19 = vpop.eup %1303 }
 0xe79   : > { %v968_v61 = vmul.f32 %v1302_v49, %v967_v54 }
 0xe7b   : > { %v969_v1 = vadd.f32 %v1302_v49, %v968_v61 }
 0xe7d   : > { %v973_v3 = vsel %vm972_vm2, %v1302_v49, %v969_v1 }
 0xe7e   : > { %v978_v5 = vsel %vm975_vm3, %v977_v2, %v973_v3 }
 0xe7f   : > { %v980_v7 = vmul.f32 1.0614054, %v978_v5 }
 0xe81   : > { %v981_v9 = vadd.f32 -1.4531521, %v980_v7 }
 0xe83   : > { %v982_v11 = vmul.f32 %v981_v9, %v978_v5 }
 0xe85   : > { %v983_v12 = vadd.f32 1.4214138, %v982_v11 }
 0xe87   : > { %v984_v14 = vmul.f32 %v983_v12, %v978_v5 }
 0xe89   : > { %v985_v40 = vadd.f32 -0.28449672, %v984_v14 }
 0xe8b   : > { %v986_v15 = vmul.f32 %v985_v40, %v978_v5 }
 0xe8d   : > { %v987_v16 = vadd.f32 0.2548296, %v986_v15 }
 0xe8f   : > { %v988_v17 = vmul.f32 %v987_v16, %v978_v5 }
 0xe91   : > { %v993_v20 = vmul.f32 %v1304_v19, %v988_v17 }
 0xe93   : > { %v994_v21 = vsub.f32 1.0, %v993_v20 }
 0xe95   : > { %v995_v23 = vmul.f32 %v994_v21, %v961_v22 }
 0xe97   : > { %v996_v25 = vadd.f32 1.0, %v995_v23 }
 0xe99   : > { %v997_v26 = vmul.f32 %v996_v25, %v958_v24 }
 0xe9b   : > { %1166 = vmatmul.msk.f32.vlgmr.msra.gmra.mxu1 %vm623_vm4, %v997_v26 }
 0xf18   : > { %v1019_v4 = vpop.f32.mrf.mxu1 }
 0xf19   : > { %v1020_v57 = vadd.f32 %v1278_v27, %v1019_v4 }
 0xf1b   : > { %v1022_v28 = vadd.f32 %v1020_v57, %v1734_v18 }
 0xf1d   : > { %1023 = vst.msk [vmem:[%s220_s29] sm:$0xff] %vm258_vm0, %v1022_v28 }
 0xf1e   : > { %1422 = shalt.err (!%p1419_p9)
}
 0xf1f   : > { %1181 = dma.vmem_to_hbm [thread:$0]  (%p1565_p4), %s1038_s30, 128, %s1040_s5, %s1025_s6  }
 0xf20 PF: > { %s1051_s10 = sand.u32 1, %s1453_s12   ;;  %p1792_p10 = scmp.ge.s32.totalorder %s1465_s15, 2 }
 0xf21   : > { %s1052_s20 = scalar_lea.sflag [#allocation4], %s1051_s10 }
 0xf22   : > { %p1195_p13 = pnand %p1792_p10, %p1569_p6 }
 0xf24   : > { %p1196_p11 = pneg %p1195_p13 }
 0xf26   : > { %1448 = dma.done.wait (%p1196_p11), %s1052_s20, 128  }
 0xf27   : > { %1450 = vsyncadd (%p1196_p11), %s1052_s20, 4294967168  ;;  %p17_p0 = scmp.ge.s32.totalorder %s1539_s4, 4   ;;  %s1793_s12 = smov %s1457_s13 }
 0xf28   : > { %s1794_s13 = smov %s1461_s14  ;;  %s1795_s14 = smov %s1550_s7 }
 0xf29   : > { %s1796_s15 = smov %s1539_s4  ;;  %19 = sbr.rel (!%p17_p0) target bundleno = 6 (0x6), region = 85 }
 0xf2e   :  { %1058 = vsyncpa [#allocation3], 1 }
 0xf2f   :  { %1060 = vsyncpa [#allocation3 + $0x1], 1 }
 0xf30   :  { %1061 = vsyncpa [#allocation6], 1 }
 0xf31   :  { %1062 = vsyncpa [#allocation4], 1 }
 0xf32   :  { %1064 = vsyncpa [#allocation4 + $0x1], 1 }

</bundles_post_ra>
